<compile_context>
chip_gen: v7x
topology: tpu7x:2x2x1
jax: 0.10.0
libtpu: 0.0.40
codegen_flags: <defaults>
</compile_context>

<pallas_src>
import jax
import jax.numpy as jnp
import numpy as np
from jax.experimental import pallas as pl
from jax.experimental.pallas import tpu as pltpu

LANE = 128          # lane tile
BATCH_TILE = 16     # bf16 sublane packing -> free (Tc,Bt,Dp)->(Tc*Bt,Dp) reshape


def _round_up(n, m):
    return ((n + m - 1) // m) * m


def _vmem_capacity_bytes():
    """Physical VMEM of the current chip; conservative v7x fallback."""
    try:
        return int(pltpu.get_tpu_info().vmem_capacity_bytes)
    except Exception:
        return 64 * 1024 * 1024


def _vmem_bytes(Tc, Bt, Dp, H, Gp, OutP):
    """Approximate VMEM footprint (bytes) of one kernel instance."""
    bf16, f32 = 2, 4
    Hs = _round_up(H, 16)                 # sublane padding of bf16 weight rows
    Hl = _round_up(H, LANE)               # lane padding of h/c scratch
    x_blocks = 2 * Tc * Bt * Dp * bf16            # double-buffered input chunk
    out_blocks = 2 * Bt * OutP * f32              # double-buffered output block
    weights = (Dp * Gp + Hs * Gp + Hs * OutP) * bf16   # single-buffered
    biases = (Gp + OutP) * 8 * f32                     # (1, n) padded to 8 sublanes
    scratch = Tc * Bt * Gp * bf16 + 2 * Bt * Hl * f32  # gx (bf16) + h + c
    return x_blocks + out_blocks + weights + biases + scratch


def _pick_time_chunk(T, requested, fits):
    if requested is not None:
        if T % requested != 0:
            raise ValueError(f"time_chunk={requested} must divide T={T}")
        return requested
    for tc in (64, 32, 16, 8, 4, 2):      # raised cap (was 16); VMEM-bounded
        if T % tc == 0 and fits(tc):
            return tc
    return 1


def wavelet_lstm_forward(x, params, *, time_chunk=None, batch_block=None):
    """x: [B, T, D] float32.  params: PyTorch-layout LSTM + Linear weights."""
    B, T, D = x.shape
    H = params["w_hh"].shape[1]            # w_hh: [4H, H]
    out_dim = params["w_lin"].shape[0]     # w_lin: [out_dim, H]

    Dp = _round_up(D, LANE)                # lane-dense x / K of input projection
    Gp = _round_up(4 * H, LANE)            # packed-gate axis, lane aligned
    OutP = _round_up(out_dim, LANE)        # lane-dense output store

    # Batch block: multiple of 16.  On v6e/v7x with B >= 256 pass
    # batch_block=256 (256x256 MXU); keep <=128 on v5e (128x128 MXU).
    if batch_block is None:
        Bt = min(128, _round_up(B, BATCH_TILE))
    else:
        Bt = _round_up(batch_block, BATCH_TILE)
    Bp = _round_up(B, Bt)
    nb = Bp // Bt

    # Explicit VMEM budgeting (v7x: 64 MiB physical; v5e/v6e: 128 MiB).
    vmem_cap = _vmem_capacity_bytes()
    budget = max(8 << 20, vmem_cap - (16 << 20))
    Tc = _pick_time_chunk(
        T, time_chunk, lambda tc: _vmem_bytes(tc, Bt, Dp, H, Gp, OutP) <= budget)
    nt = T // Tc
    footprint = _vmem_bytes(Tc, Bt, Dp, H, Gp, OutP)
    vmem_limit = int(min(vmem_cap, max(32 << 20, footprint + (8 << 20))))
    unroll = True if Tc <= 16 else 8       # keep compile size bounded at Tc>16

    # ---- weight prep (wrapper-side glue) -----------------------------------
    f32 = jnp.float32

    def pad_gates(a):                      # pad the leading 4H axis to Gp
        a = jnp.asarray(a, f32)
        return jnp.pad(a, [(0, Gp - 4 * H)] + [(0, 0)] * (a.ndim - 1))

    wih = pad_gates(params["w_ih"])                                    # (Gp, D)
    wih_t = jnp.pad(wih, ((0, 0), (0, Dp - D))).T.astype(jnp.bfloat16)  # (Dp, Gp)
    whh_t = pad_gates(params["w_hh"]).T.astype(jnp.bfloat16)            # (H, Gp)
    b = pad_gates(params["b_ih"] + params["b_hh"]).reshape(1, Gp)       # fp32
    wlin_t = jnp.pad(jnp.asarray(params["w_lin"], f32),
                     ((0, OutP - out_dim), (0, 0))).T.astype(jnp.bfloat16)  # (H, OutP)
    blin = jnp.pad(jnp.asarray(params["b_lin"], f32),
                   (0, OutP - out_dim)).reshape(1, OutP)

    # x: [B,T,D] -> time-major, batch padded to Bp, D padded to Dp, bf16.
    xp = jnp.pad(x.astype(f32), ((0, Bp - B), (0, 0), (0, Dp - D)))
    xp = jnp.transpose(xp, (1, 0, 2)).astype(jnp.bfloat16)              # (T, Bp, Dp)

    # ---- kernel ------------------------------------------------------------
    def kernel(x_ref, wih_ref, whh_ref, b_ref, wlin_ref, blin_ref,
               out_ref, h_sc, c_sc, gx_sc):
        # Recurrence correctness requires: time axis is the LAST ("arbitrary",
        # sequential) grid axis, h/c are reset at t_chunk == 0 per batch block,
        # and out is only written on the final chunk (the out block index is
        # constant in tt, so write-back happens after the last chunk).
        t_chunk = pl.program_id(1)

        @pl.when(t_chunk == 0)
        def _():
            h_sc[...] = jnp.zeros_like(h_sc)
            c_sc[...] = jnp.zeros_like(c_sc)

        tc, bt, dp = x_ref.shape
        gp = gx_sc.shape[-1]

        # Hoisted input projection for the whole chunk: one MXU matmul with
        # M = Tc*Bt.  Stored in bf16 (halves the dominant VMEM scratch).
        x_flat = x_ref[...].reshape(tc * bt, dp)            # layout-free reshape
        gx = jnp.dot(x_flat, wih_ref[...], preferred_element_type=jnp.float32)
        gx = gx + b_ref[...]
        gx_sc[...] = gx.astype(gx_sc.dtype).reshape(tc, bt, gp)

        whh = whh_ref[...]                # hoist invariant load out of the loop

        def step(t, carry):
            h, c = carry
            gates = gx_sc[t].astype(jnp.float32) + jnp.dot(
                h.astype(whh.dtype), whh, preferred_element_type=jnp.float32)
            # Packed gate layout [i|f|g|o]; slices at the true H (no per-gate
            # lane padding -> no padded MXU/EUP work for H < 128).
            i = jax.nn.sigmoid(gates[:, 0 * H:1 * H])
            f = jax.nn.sigmoid(gates[:, 1 * H:2 * H])
            g = jnp.tanh(gates[:, 2 * H:3 * H])
            o = jax.nn.sigmoid(gates[:, 3 * H:4 * H])
            c = f * c + i * g
            h = o * jnp.tanh(c)
            return (h, c)

        h, c = jax.lax.fori_loop(0, tc, step, (h_sc[...], c_sc[...]),
                                 unroll=unroll)
        h_sc[...] = h
        c_sc[...] = c

        @pl.when(t_chunk == pl.num_programs(1) - 1)
        def _():
            # Final Linear on the last hidden state; OutP is a multiple of 128
            # so the store is lane-dense (no masked vst).
            y = jnp.dot(h.astype(wlin_ref.dtype), wlin_ref[...],
                        preferred_element_type=jnp.float32) + blin_ref[...]
            out_ref[...] = y.astype(out_ref.dtype)

    # ---- pallas_call -------------------------------------------------------
    def build_and_run(single_buffer_weights):
        const_kw = ({"pipeline_mode": pl.Buffered(1)}
                    if single_buffer_weights else {})
        grid_spec = pltpu.PrefetchScalarGridSpec(
            num_scalar_prefetch=0,
            grid=(nb, nt),                         # (batch blocks, time chunks)
            in_specs=[
                pl.BlockSpec((Tc, Bt, Dp), lambda bb, tt: (tt, bb, 0)),
                # Grid-invariant operands: single-buffered (saves VMEM).
                pl.BlockSpec((Dp, Gp), lambda bb, tt: (0, 0), **const_kw),
                pl.BlockSpec((H, Gp), lambda bb, tt: (0, 0), **const_kw),
                pl.BlockSpec((1, Gp), lambda bb, tt: (0, 0), **const_kw),
                pl.BlockSpec((H, OutP), lambda bb, tt: (0, 0), **const_kw),
                pl.BlockSpec((1, OutP), lambda bb, tt: (0, 0), **const_kw),
            ],
            out_specs=pl.BlockSpec((Bt, OutP), lambda bb, tt: (bb, 0)),
            scratch_shapes=[
                pltpu.VMEM((Bt, H), jnp.float32),        # h carry (fp32)
                pltpu.VMEM((Bt, H), jnp.float32),        # c carry (fp32)
                pltpu.VMEM((Tc, Bt, Gp), jnp.bfloat16),  # hoisted gates_x (bf16)
            ],
        )
        out = pl.pallas_call(
            kernel,
            out_shape=jax.ShapeDtypeStruct((Bp, OutP), jnp.float32),
            grid_spec=grid_spec,
            compiler_params=pltpu.CompilerParams(
                dimension_semantics=("parallel", "arbitrary"),
                vmem_limit_bytes=vmem_limit),
        )(xp, wih_t, whh_t, b, wlin_t, blin)
        return jax.block_until_ready(out)

    try:
        out_padded = build_and_run(True)
    except Exception:
        # Guard for jax versions without BlockSpec.pipeline_mode / Buffered(1):
        # fall back to default double-buffered weights (identical results).
        out_padded = build_and_run(False)

    return out_padded[:B, :out_dim]


def _reference_forward(x, params):
    """Pure-JAX fp32 reference matching torch.nn.LSTM (i,f,g,o) + Linear."""
    B, T, D = x.shape
    H = params["w_hh"].shape[1]
    w_ih, w_hh = params["w_ih"], params["w_hh"]
    b = params["b_ih"] + params["b_hh"]

    def step(carry, x_t):
        h, c = carry
        gates = x_t @ w_ih.T + h @ w_hh.T + b
        i = jax.nn.sigmoid(gates[:, 0 * H:1 * H])
        f = jax.nn.sigmoid(gates[:, 1 * H:2 * H])
        g = jnp.tanh(gates[:, 2 * H:3 * H])
        o = jax.nn.sigmoid(gates[:, 3 * H:4 * H])
        c = f * c + i * g
        h = o * jnp.tanh(c)
        return (h, c), h

    h0 = jnp.zeros((B, H), jnp.float32)
    c0 = jnp.zeros((B, H), jnp.float32)
    (h_T, _), _ = jax.lax.scan(step, (h0, c0), jnp.swapaxes(x, 0, 1))
    return h_T @ params["w_lin"].T + params["b_lin"]


def init_params(key, input_dim, hidden_dim, output_dim):
    """Deterministic synthetic init (uniform +-1/sqrt(H), like nn.LSTM default)."""
    ks = jax.random.split(key, 6)
    s = 1.0 / np.sqrt(hidden_dim)
    u = lambda k, shape: jax.random.uniform(k, shape, jnp.float32, -s, s)
    return {
        "w_ih": u(ks[0], (4 * hidden_dim, input_dim)),
        "w_hh": u(ks[1], (4 * hidden_dim, hidden_dim)),
        "b_ih": u(ks[2], (4 * hidden_dim,)),
        "b_hh": u(ks[3], (4 * hidden_dim,)),
        "w_lin": u(ks[4], (output_dim, hidden_dim)),
        "b_lin": u(ks[5], (output_dim,)),
    }


if __name__ == "__main__":
    B, T, D, H, OUT = 2, 8, 4, 32, 1

    key = jax.random.PRNGKey(0)
    k_x, k_p = jax.random.split(key)
    x = jax.random.normal(k_x, (B, T, D), jnp.float32)
    params = init_params(k_p, D, H, OUT)

    # time_chunk=4 -> 2 sequential time chunks, exercising the h/c scratch carry.
    y = wavelet_lstm_forward(x, params, time_chunk=4)
    y = jax.block_until_ready(y)

    y_ref = jax.block_until_ready(_reference_forward(x, params))
    # bf16 MXU inputs / bf16 gx scratch with fp32 accumulation and fp32 gate
    # math -> loose tolerance vs the fp32 reference.
    np.testing.assert_allclose(np.asarray(y), np.asarray(y_ref),
                               rtol=3e-2, atol=3e-2)

    print("KERNEL_OK")
</pallas_src>

<mosaic_0001>
module attributes {stable_mosaic.version = 11 : i64} {
  func.func @kernel(%arg0: i32, %arg1: i32, %arg2: memref<4x16x128xbf16, #tpu.memory_space<vmem>>, %arg3: memref<128x128xbf16, #tpu.memory_space<vmem>>, %arg4: memref<32x128xbf16, #tpu.memory_space<vmem>>, %arg5: memref<1x128xf32, #tpu.memory_space<vmem>>, %arg6: memref<32x128xbf16, #tpu.memory_space<vmem>>, %arg7: memref<1x128xf32, #tpu.memory_space<vmem>>, %arg8: memref<16x128xf32, #tpu.memory_space<vmem>>, %arg9: memref<16x32xf32, #tpu.memory_space<vmem>>, %arg10: memref<16x32xf32, #tpu.memory_space<vmem>>, %arg11: memref<4x16x128xbf16, #tpu.memory_space<vmem>>) attributes {dimension_semantics = [#tpu.dimension_semantics<parallel>, #tpu.dimension_semantics<arbitrary>], iteration_bounds = array<i64: 1, 2>, scalar_prefetch = 0 : i64, scratch_operands = 3 : i64, tpu.core_type = #tpu.core_type<tc>, window_params = [{transform_indices = @transform_0, window_bounds = array<i64: 4, 16, 128>}, {pipeline_mode = #tpu.pipeline_mode<synchronous>, transform_indices = @transform_1, window_bounds = array<i64: 128, 128>}, {pipeline_mode = #tpu.pipeline_mode<synchronous>, transform_indices = @transform_2, window_bounds = array<i64: 32, 128>}, {pipeline_mode = #tpu.pipeline_mode<synchronous>, transform_indices = @transform_3, window_bounds = array<i64: 1, 128>}, {pipeline_mode = #tpu.pipeline_mode<synchronous>, transform_indices = @transform_4, window_bounds = array<i64: 32, 128>}, {pipeline_mode = #tpu.pipeline_mode<synchronous>, transform_indices = @transform_5, window_bounds = array<i64: 1, 128>}, {transform_indices = @transform_6, window_bounds = array<i64: 16, 128>}]} {
    %c0_i32 = arith.constant 0 : i32
    %0 = arith.cmpi eq, %arg1, %c0_i32 : i32
    %1 = arith.extui %0 : i1 to i32
    %c0_i32_0 = arith.constant 0 : i32
    %2 = arith.cmpi ne, %1, %c0_i32_0 : i32
    scf.if %2 {
      %cst_47 = arith.constant 0.000000e+00 : f32
      %149 = vector.broadcast %cst_47 : f32 to vector<16x32xf32>
      %c0_48 = arith.constant 0 : index
      %c0_49 = arith.constant 0 : index
      %150 = vector.load %arg9[%c0_48, %c0_49] : memref<16x32xf32, #tpu.memory_space<vmem>>, vector<16x32xf32>
      tpu.vector_store %arg9[%c0_48, %c0_49], %149 {strides = array<i32>} : memref<16x32xf32, #tpu.memory_space<vmem>>, vector<16x32xf32>,
      %cst_50 = arith.constant 0.000000e+00 : f32
      %151 = vector.broadcast %cst_50 : f32 to vector<16x32xf32>
      %c0_51 = arith.constant 0 : index
      %c0_52 = arith.constant 0 : index
      %152 = vector.load %arg10[%c0_51, %c0_52] : memref<16x32xf32, #tpu.memory_space<vmem>>, vector<16x32xf32>
      tpu.vector_store %arg10[%c0_51, %c0_52], %151 {strides = array<i32>} : memref<16x32xf32, #tpu.memory_space<vmem>>, vector<16x32xf32>,
    } else {
    }
    %c0 = arith.constant 0 : index
    %c0_1 = arith.constant 0 : index
    %c0_2 = arith.constant 0 : index
    %3 = vector.load %arg2[%c0, %c0_1, %c0_2] : memref<4x16x128xbf16, #tpu.memory_space<vmem>>, vector<4x16x128xbf16>
    %4 = vector.shape_cast %3 : vector<4x16x128xbf16> to vector<64x128xbf16>
    %c0_3 = arith.constant 0 : index
    %c0_4 = arith.constant 0 : index
    %5 = vector.load %arg3[%c0_3, %c0_4] : memref<128x128xbf16, #tpu.memory_space<vmem>>, vector<128x128xbf16>
    %cst = arith.constant dense<0.000000e+00> : vector<64x128xf32>
    %6 = tpu.matmul %4, %5, %cst {dimension_numbers = #tpu.dot_dimension_numbers<[1], [0], [0], [1], [0, 0, 1, 1], [], []>} : vector<64x128xbf16>, vector<128x128xbf16>, vector<64x128xf32> -> vector<64x128xf32>
    %c0_5 = arith.constant 0 : index
    %c0_6 = arith.constant 0 : index
    %7 = vector.load %arg5[%c0_5, %c0_6] : memref<1x128xf32, #tpu.memory_space<vmem>>, vector<1x128xf32>
    %8 = vector.broadcast %7 : vector<1x128xf32> to vector<64x128xf32>
    %9 = arith.addf %6, %8 : vector<64x128xf32>
    %10 = arith.truncf %9 : vector<64x128xf32> to vector<64x128xbf16>
    %11 = vector.shape_cast %10 : vector<64x128xbf16> to vector<4x16x128xbf16>
    %c0_7 = arith.constant 0 : index
    %c0_8 = arith.constant 0 : index
    %c0_9 = arith.constant 0 : index
    %12 = vector.load %arg11[%c0_7, %c0_8, %c0_9] : memref<4x16x128xbf16, #tpu.memory_space<vmem>>, vector<4x16x128xbf16>
    tpu.vector_store %arg11[%c0_7, %c0_8, %c0_9], %11 {strides = array<i32>} : memref<4x16x128xbf16, #tpu.memory_space<vmem>>, vector<4x16x128xbf16>,
    %c0_10 = arith.constant 0 : index
    %c0_11 = arith.constant 0 : index
    %13 = vector.load %arg4[%c0_10, %c0_11] : memref<32x128xbf16, #tpu.memory_space<vmem>>, vector<32x128xbf16>
    %c0_12 = arith.constant 0 : index
    %c0_13 = arith.constant 0 : index
    %14 = vector.load %arg9[%c0_12, %c0_13] : memref<16x32xf32, #tpu.memory_space<vmem>>, vector<16x32xf32>
    %c0_14 = arith.constant 0 : index
    %c0_15 = arith.constant 0 : index
    %15 = vector.load %arg10[%c0_14, %c0_15] : memref<16x32xf32, #tpu.memory_space<vmem>>, vector<16x32xf32>
    %c0_i32_16 = arith.constant 0 : i32
    %16 = arith.index_cast %c0_i32_16 : i32 to index
    %c0_17 = arith.constant 0 : index
    %c0_18 = arith.constant 0 : index
    %17 = vector.load %arg11[%16, %c0_17, %c0_18] : memref<4x16x128xbf16, #tpu.memory_space<vmem>>, vector<1x16x128xbf16>
    %18 = vector.shape_cast %17 : vector<1x16x128xbf16> to vector<16x128xbf16>
    %19 = arith.extf %18 : vector<16x128xbf16> to vector<16x128xf32>
    %20 = arith.truncf %14 : vector<16x32xf32> to vector<16x32xbf16>
    %cst_19 = arith.constant dense<0.000000e+00> : vector<16x128xf32>
    %21 = tpu.matmul %20, %13, %cst_19 {dimension_numbers = #tpu.dot_dimension_numbers<[1], [0], [0], [1], [0, 0, 1, 1], [], []>} : vector<16x32xbf16>, vector<32x128xbf16>, vector<16x128xf32> -> vector<16x128xf32>
    %22 = arith.addf %19, %21 : vector<16x128xf32>
    %23 = vector.extract_strided_slice %22 {offsets = [0, 0], sizes = [16, 32], strides = [1, 1]} : vector<16x128xf32> to vector<16x32xf32>
    %24 = arith.negf %23 : vector<16x32xf32>
    %25 = math.exp %24 : vector<16x32xf32>
    %cst_20 = arith.constant 1.000000e+00 : f32
    %26 = vector.broadcast %cst_20 : f32 to vector<16x32xf32>
    %27 = arith.addf %26, %25 : vector<16x32xf32>
    %28 = arith.divf %26, %27 : vector<16x32xf32>
    %29 = vector.extract_strided_slice %22 {offsets = [0, 32], sizes = [16, 32], strides = [1, 1]} : vector<16x128xf32> to vector<16x32xf32>
    %30 = arith.negf %29 : vector<16x32xf32>
    %31 = math.exp %30 : vector<16x32xf32>
    %cst_21 = arith.constant 1.000000e+00 : f32
    %32 = vector.broadcast %cst_21 : f32 to vector<16x32xf32>
    %33 = arith.addf %32, %31 : vector<16x32xf32>
    %34 = arith.divf %32, %33 : vector<16x32xf32>
    %35 = vector.extract_strided_slice %22 {offsets = [0, 64], sizes = [16, 32], strides = [1, 1]} : vector<16x128xf32> to vector<16x32xf32>
    %36 = math.tanh %35 : vector<16x32xf32>
    %37 = vector.extract_strided_slice %22 {offsets = [0, 96], sizes = [16, 32], strides = [1, 1]} : vector<16x128xf32> to vector<16x32xf32>
    %38 = arith.negf %37 : vector<16x32xf32>
    %39 = math.exp %38 : vector<16x32xf32>
    %cst_22 = arith.constant 1.000000e+00 : f32
    %40 = vector.broadcast %cst_22 : f32 to vector<16x32xf32>
    %41 = arith.addf %40, %39 : vector<16x32xf32>
    %42 = arith.divf %40, %41 : vector<16x32xf32>
    %43 = arith.mulf %34, %15 : vector<16x32xf32>
    %44 = arith.mulf %28, %36 : vector<16x32xf32>
    %45 = arith.addf %43, %44 : vector<16x32xf32>
    %46 = math.tanh %45 : vector<16x32xf32>
    %47 = arith.mulf %42, %46 : vector<16x32xf32>
    %c1_i32 = arith.constant 1 : i32
    %48 = arith.index_cast %c1_i32 : i32 to index
    %c0_23 = arith.constant 0 : index
    %c0_24 = arith.constant 0 : index
    %49 = vector.load %arg11[%48, %c0_23, %c0_24] : memref<4x16x128xbf16, #tpu.memory_space<vmem>>, vector<1x16x128xbf16>
    %50 = vector.shape_cast %49 : vector<1x16x128xbf16> to vector<16x128xbf16>
    %51 = arith.extf %50 : vector<16x128xbf16> to vector<16x128xf32>
    %52 = arith.truncf %47 : vector<16x32xf32> to vector<16x32xbf16>
    %cst_25 = arith.constant dense<0.000000e+00> : vector<16x128xf32>
    %53 = tpu.matmul %52, %13, %cst_25 {dimension_numbers = #tpu.dot_dimension_numbers<[1], [0], [0], [1], [0, 0, 1, 1], [], []>} : vector<16x32xbf16>, vector<32x128xbf16>, vector<16x128xf32> -> vector<16x128xf32>
    %54 = arith.addf %51, %53 : vector<16x128xf32>
    %55 = vector.extract_strided_slice %54 {offsets = [0, 0], sizes = [16, 32], strides = [1, 1]} : vector<16x128xf32> to vector<16x32xf32>
    %56 = arith.negf %55 : vector<16x32xf32>
    %57 = math.exp %56 : vector<16x32xf32>
    %cst_26 = arith.constant 1.000000e+00 : f32
    %58 = vector.broadcast %cst_26 : f32 to vector<16x32xf32>
    %59 = arith.addf %58, %57 : vector<16x32xf32>
    %60 = arith.divf %58, %59 : vector<16x32xf32>
    %61 = vector.extract_strided_slice %54 {offsets = [0, 32], sizes = [16, 32], strides = [1, 1]} : vector<16x128xf32> to vector<16x32xf32>
    %62 = arith.negf %61 : vector<16x32xf32>
    %63 = math.exp %62 : vector<16x32xf32>
    %cst_27 = arith.constant 1.000000e+00 : f32
    %64 = vector.broadcast %cst_27 : f32 to vector<16x32xf32>
    %65 = arith.addf %64, %63 : vector<16x32xf32>
    %66 = arith.divf %64, %65 : vector<16x32xf32>
    %67 = vector.extract_strided_slice %54 {offsets = [0, 64], sizes = [16, 32], strides = [1, 1]} : vector<16x128xf32> to vector<16x32xf32>
    %68 = math.tanh %67 : vector<16x32xf32>
    %69 = vector.extract_strided_slice %54 {offsets = [0, 96], sizes = [16, 32], strides = [1, 1]} : vector<16x128xf32> to vector<16x32xf32>
    %70 = arith.negf %69 : vector<16x32xf32>
    %71 = math.exp %70 : vector<16x32xf32>
    %cst_28 = arith.constant 1.000000e+00 : f32
    %72 = vector.broadcast %cst_28 : f32 to vector<16x32xf32>
    %73 = arith.addf %72, %71 : vector<16x32xf32>
    %74 = arith.divf %72, %73 : vector<16x32xf32>
    %75 = arith.mulf %66, %45 : vector<16x32xf32>
    %76 = arith.mulf %60, %68 : vector<16x32xf32>
    %77 = arith.addf %75, %76 : vector<16x32xf32>
    %78 = math.tanh %77 : vector<16x32xf32>
    %79 = arith.mulf %74, %78 : vector<16x32xf32>
    %c2_i32 = arith.constant 2 : i32
    %80 = arith.index_cast %c2_i32 : i32 to index
    %c0_29 = arith.constant 0 : index
    %c0_30 = arith.constant 0 : index
    %81 = vector.load %arg11[%80, %c0_29, %c0_30] : memref<4x16x128xbf16, #tpu.memory_space<vmem>>, vector<1x16x128xbf16>
    %82 = vector.shape_cast %81 : vector<1x16x128xbf16> to vector<16x128xbf16>
    %83 = arith.extf %82 : vector<16x128xbf16> to vector<16x128xf32>
    %84 = arith.truncf %79 : vector<16x32xf32> to vector<16x32xbf16>
    %cst_31 = arith.constant dense<0.000000e+00> : vector<16x128xf32>
    %85 = tpu.matmul %84, %13, %cst_31 {dimension_numbers = #tpu.dot_dimension_numbers<[1], [0], [0], [1], [0, 0, 1, 1], [], []>} : vector<16x32xbf16>, vector<32x128xbf16>, vector<16x128xf32> -> vector<16x128xf32>
    %86 = arith.addf %83, %85 : vector<16x128xf32>
    %87 = vector.extract_strided_slice %86 {offsets = [0, 0], sizes = [16, 32], strides = [1, 1]} : vector<16x128xf32> to vector<16x32xf32>
    %88 = arith.negf %87 : vector<16x32xf32>
    %89 = math.exp %88 : vector<16x32xf32>
    %cst_32 = arith.constant 1.000000e+00 : f32
    %90 = vector.broadcast %cst_32 : f32 to vector<16x32xf32>
    %91 = arith.addf %90, %89 : vector<16x32xf32>
    %92 = arith.divf %90, %91 : vector<16x32xf32>
    %93 = vector.extract_strided_slice %86 {offsets = [0, 32], sizes = [16, 32], strides = [1, 1]} : vector<16x128xf32> to vector<16x32xf32>
    %94 = arith.negf %93 : vector<16x32xf32>
    %95 = math.exp %94 : vector<16x32xf32>
    %cst_33 = arith.constant 1.000000e+00 : f32
    %96 = vector.broadcast %cst_33 : f32 to vector<16x32xf32>
    %97 = arith.addf %96, %95 : vector<16x32xf32>
    %98 = arith.divf %96, %97 : vector<16x32xf32>
    %99 = vector.extract_strided_slice %86 {offsets = [0, 64], sizes = [16, 32], strides = [1, 1]} : vector<16x128xf32> to vector<16x32xf32>
    %100 = math.tanh %99 : vector<16x32xf32>
    %101 = vector.extract_strided_slice %86 {offsets = [0, 96], sizes = [16, 32], strides = [1, 1]} : vector<16x128xf32> to vector<16x32xf32>
    %102 = arith.negf %101 : vector<16x32xf32>
    %103 = math.exp %102 : vector<16x32xf32>
    %cst_34 = arith.constant 1.000000e+00 : f32
    %104 = vector.broadcast %cst_34 : f32 to vector<16x32xf32>
    %105 = arith.addf %104, %103 : vector<16x32xf32>
    %106 = arith.divf %104, %105 : vector<16x32xf32>
    %107 = arith.mulf %98, %77 : vector<16x32xf32>
    %108 = arith.mulf %92, %100 : vector<16x32xf32>
    %109 = arith.addf %107, %108 : vector<16x32xf32>
    %110 = math.tanh %109 : vector<16x32xf32>
    %111 = arith.mulf %106, %110 : vector<16x32xf32>
    %c3_i32 = arith.constant 3 : i32
    %112 = arith.index_cast %c3_i32 : i32 to index
    %c0_35 = arith.constant 0 : index
    %c0_36 = arith.constant 0 : index
    %113 = vector.load %arg11[%112, %c0_35, %c0_36] : memref<4x16x128xbf16, #tpu.memory_space<vmem>>, vector<1x16x128xbf16>
    %114 = vector.shape_cast %113 : vector<1x16x128xbf16> to vector<16x128xbf16>
    %115 = arith.extf %114 : vector<16x128xbf16> to vector<16x128xf32>
    %116 = arith.truncf %111 : vector<16x32xf32> to vector<16x32xbf16>
    %cst_37 = arith.constant dense<0.000000e+00> : vector<16x128xf32>
    %117 = tpu.matmul %116, %13, %cst_37 {dimension_numbers = #tpu.dot_dimension_numbers<[1], [0], [0], [1], [0, 0, 1, 1], [], []>} : vector<16x32xbf16>, vector<32x128xbf16>, vector<16x128xf32> -> vector<16x128xf32>
    %118 = arith.addf %115, %117 : vector<16x128xf32>
    %119 = vector.extract_strided_slice %118 {offsets = [0, 0], sizes = [16, 32], strides = [1, 1]} : vector<16x128xf32> to vector<16x32xf32>
    %120 = arith.negf %119 : vector<16x32xf32>
    %121 = math.exp %120 : vector<16x32xf32>
    %cst_38 = arith.constant 1.000000e+00 : f32
    %122 = vector.broadcast %cst_38 : f32 to vector<16x32xf32>
    %123 = arith.addf %122, %121 : vector<16x32xf32>
    %124 = arith.divf %122, %123 : vector<16x32xf32>
    %125 = vector.extract_strided_slice %118 {offsets = [0, 32], sizes = [16, 32], strides = [1, 1]} : vector<16x128xf32> to vector<16x32xf32>
    %126 = arith.negf %125 : vector<16x32xf32>
    %127 = math.exp %126 : vector<16x32xf32>
    %cst_39 = arith.constant 1.000000e+00 : f32
    %128 = vector.broadcast %cst_39 : f32 to vector<16x32xf32>
    %129 = arith.addf %128, %127 : vector<16x32xf32>
    %130 = arith.divf %128, %129 : vector<16x32xf32>
    %131 = vector.extract_strided_slice %118 {offsets = [0, 64], sizes = [16, 32], strides = [1, 1]} : vector<16x128xf32> to vector<16x32xf32>
    %132 = math.tanh %131 : vector<16x32xf32>
    %133 = vector.extract_strided_slice %118 {offsets = [0, 96], sizes = [16, 32], strides = [1, 1]} : vector<16x128xf32> to vector<16x32xf32>
    %134 = arith.negf %133 : vector<16x32xf32>
    %135 = math.exp %134 : vector<16x32xf32>
    %cst_40 = arith.constant 1.000000e+00 : f32
    %136 = vector.broadcast %cst_40 : f32 to vector<16x32xf32>
    %137 = arith.addf %136, %135 : vector<16x32xf32>
    %138 = arith.divf %136, %137 : vector<16x32xf32>
    %139 = arith.mulf %130, %109 : vector<16x32xf32>
    %140 = arith.mulf %124, %132 : vector<16x32xf32>
    %141 = arith.addf %139, %140 : vector<16x32xf32>
    %142 = math.tanh %141 : vector<16x32xf32>
    %143 = arith.mulf %138, %142 : vector<16x32xf32>
    %c4_i32 = arith.constant 4 : i32
    %c0_41 = arith.constant 0 : index
    %c0_42 = arith.constant 0 : index
    %144 = vector.load %arg9[%c0_41, %c0_42] : memref<16x32xf32, #tpu.memory_space<vmem>>, vector<16x32xf32>
    tpu.vector_store %arg9[%c0_41, %c0_42], %143 {strides = array<i32>} : memref<16x32xf32, #tpu.memory_space<vmem>>, vector<16x32xf32>,
    %c0_43 = arith.constant 0 : index
    %c0_44 = arith.constant 0 : index
    %145 = vector.load %arg10[%c0_43, %c0_44] : memref<16x32xf32, #tpu.memory_space<vmem>>, vector<16x32xf32>
    tpu.vector_store %arg10[%c0_43, %c0_44], %141 {strides = array<i32>} : memref<16x32xf32, #tpu.memory_space<vmem>>, vector<16x32xf32>,
    %c1_i32_45 = arith.constant 1 : i32
    %146 = arith.cmpi eq, %arg1, %c1_i32_45 : i32
    %147 = arith.extui %146 : i1 to i32
    %c0_i32_46 = arith.constant 0 : i32
    %148 = arith.cmpi ne, %147, %c0_i32_46 : i32
    scf.if %148 {
      %149 = arith.truncf %143 : vector<16x32xf32> to vector<16x32xbf16>
      %c0_47 = arith.constant 0 : index
      %c0_48 = arith.constant 0 : index
      %150 = vector.load %arg6[%c0_47, %c0_48] : memref<32x128xbf16, #tpu.memory_space<vmem>>, vector<32x128xbf16>
      %cst_49 = arith.constant dense<0.000000e+00> : vector<16x128xf32>
      %151 = tpu.matmul %149, %150, %cst_49 {dimension_numbers = #tpu.dot_dimension_numbers<[1], [0], [0], [1], [0, 0, 1, 1], [], []>} : vector<16x32xbf16>, vector<32x128xbf16>, vector<16x128xf32> -> vector<16x128xf32>
      %c0_50 = arith.constant 0 : index
      %c0_51 = arith.constant 0 : index
      %152 = vector.load %arg7[%c0_50, %c0_51] : memref<1x128xf32, #tpu.memory_space<vmem>>, vector<1x128xf32>
      %153 = vector.broadcast %152 : vector<1x128xf32> to vector<16x128xf32>
      %154 = arith.addf %151, %153 : vector<16x128xf32>
      %c0_52 = arith.constant 0 : index
      %c0_53 = arith.constant 0 : index
      %155 = vector.load %arg8[%c0_52, %c0_53] : memref<16x128xf32, #tpu.memory_space<vmem>>, vector<16x128xf32>
      tpu.vector_store %arg8[%c0_52, %c0_53], %154 {strides = array<i32>} : memref<16x128xf32, #tpu.memory_space<vmem>>, vector<16x128xf32>,
    } else {
    }
    return
  }
  func.func @transform_0(%arg0: i32, %arg1: i32) -> (i32, i32, i32) {
    %c0_i32 = arith.constant 0 : i32
    %c0_i32_0 = arith.constant 0 : i32
    return %arg1, %arg0, %c0_i32 : i32, i32, i32
  }
  func.func @transform_1(%arg0: i32, %arg1: i32) -> (i32, i32) {
    %c0_i32 = arith.constant 0 : i32
    %c0_i32_0 = arith.constant 0 : i32
    %c0_i32_1 = arith.constant 0 : i32
    return %c0_i32, %c0_i32_0 : i32, i32
  }
  func.func @transform_2(%arg0: i32, %arg1: i32) -> (i32, i32) {
    %c0_i32 = arith.constant 0 : i32
    %c0_i32_0 = arith.constant 0 : i32
    %c0_i32_1 = arith.constant 0 : i32
    return %c0_i32, %c0_i32_0 : i32, i32
  }
  func.func @transform_3(%arg0: i32, %arg1: i32) -> (i32, i32) {
    %c0_i32 = arith.constant 0 : i32
    %c0_i32_0 = arith.constant 0 : i32
    %c0_i32_1 = arith.constant 0 : i32
    return %c0_i32, %c0_i32_0 : i32, i32
  }
  func.func @transform_4(%arg0: i32, %arg1: i32) -> (i32, i32) {
    %c0_i32 = arith.constant 0 : i32
    %c0_i32_0 = arith.constant 0 : i32
    %c0_i32_1 = arith.constant 0 : i32
    return %c0_i32, %c0_i32_0 : i32, i32
  }
  func.func @transform_5(%arg0: i32, %arg1: i32) -> (i32, i32) {
    %c0_i32 = arith.constant 0 : i32
    %c0_i32_0 = arith.constant 0 : i32
    %c0_i32_1 = arith.constant 0 : i32
    return %c0_i32, %c0_i32_0 : i32, i32
  }
  func.func @transform_6(%arg0: i32, %arg1: i32) -> (i32, i32) {
    %c0_i32 = arith.constant 0 : i32
    %c0_i32_0 = arith.constant 0 : i32
    return %arg0, %c0_i32 : i32, i32
  }
}

module attributes {stable_mosaic.version = 11 : i64} {
  func.func @kernel(%arg0: i32, %arg1: i32, %arg2: memref<4x16x128xbf16, #tpu.memory_space<vmem>>, %arg3: memref<128x128xbf16, #tpu.memory_space<vmem>>, %arg4: memref<32x128xbf16, #tpu.memory_space<vmem>>, %arg5: memref<1x128xf32, #tpu.memory_space<vmem>>, %arg6: memref<32x128xbf16, #tpu.memory_space<vmem>>, %arg7: memref<1x128xf32, #tpu.memory_space<vmem>>, %arg8: memref<16x128xf32, #tpu.memory_space<vmem>>, %arg9: memref<16x32xf32, #tpu.memory_space<vmem>>, %arg10: memref<16x32xf32, #tpu.memory_space<vmem>>, %arg11: memref<4x16x128xbf16, #tpu.memory_space<vmem>>) attributes {dimension_semantics = [#tpu.dimension_semantics<parallel>, #tpu.dimension_semantics<arbitrary>], iteration_bounds = array<i64: 1, 2>, scalar_prefetch = 0 : i64, scratch_operands = 3 : i64, tpu.core_type = #tpu.core_type<tc>, window_params = [{transform_indices = @transform_0, window_bounds = array<i64: 4, 16, 128>}, {pipeline_mode = #tpu.pipeline_mode<synchronous>, transform_indices = @transform_1, window_bounds = array<i64: 128, 128>}, {pipeline_mode = #tpu.pipeline_mode<synchronous>, transform_indices = @transform_2, window_bounds = array<i64: 32, 128>}, {pipeline_mode = #tpu.pipeline_mode<synchronous>, transform_indices = @transform_3, window_bounds = array<i64: 1, 128>}, {pipeline_mode = #tpu.pipeline_mode<synchronous>, transform_indices = @transform_4, window_bounds = array<i64: 32, 128>}, {pipeline_mode = #tpu.pipeline_mode<synchronous>, transform_indices = @transform_5, window_bounds = array<i64: 1, 128>}, {transform_indices = @transform_6, window_bounds = array<i64: 16, 128>}]} {
    %c0_i32 = arith.constant 0 : i32
    %0 = arith.cmpi eq, %arg1, %c0_i32 : i32
    %1 = arith.extui %0 : i1 to i32
    %c0_i32_0 = arith.constant 0 : i32
    %2 = arith.cmpi ne, %1, %c0_i32_0 : i32
    scf.if %2 {
      %cst_47 = arith.constant 0.000000e+00 : f32
      %149 = vector.broadcast %cst_47 : f32 to vector<16x32xf32>
      %c0_48 = arith.constant 0 : index
      %c0_49 = arith.constant 0 : index
      %150 = vector.load %arg9[%c0_48, %c0_49] : memref<16x32xf32, #tpu.memory_space<vmem>>, vector<16x32xf32>
      tpu.vector_store %arg9[%c0_48, %c0_49], %149 {strides = array<i32>} : memref<16x32xf32, #tpu.memory_space<vmem>>, vector<16x32xf32>,
      %cst_50 = arith.constant 0.000000e+00 : f32
      %151 = vector.broadcast %cst_50 : f32 to vector<16x32xf32>
      %c0_51 = arith.constant 0 : index
      %c0_52 = arith.constant 0 : index
      %152 = vector.load %arg10[%c0_51, %c0_52] : memref<16x32xf32, #tpu.memory_space<vmem>>, vector<16x32xf32>
      tpu.vector_store %arg10[%c0_51, %c0_52], %151 {strides = array<i32>} : memref<16x32xf32, #tpu.memory_space<vmem>>, vector<16x32xf32>,
    } else {
    }
    %c0 = arith.constant 0 : index
    %c0_1 = arith.constant 0 : index
    %c0_2 = arith.constant 0 : index
    %3 = vector.load %arg2[%c0, %c0_1, %c0_2] : memref<4x16x128xbf16, #tpu.memory_space<vmem>>, vector<4x16x128xbf16>
    %4 = vector.shape_cast %3 : vector<4x16x128xbf16> to vector<64x128xbf16>
    %c0_3 = arith.constant 0 : index
    %c0_4 = arith.constant 0 : index
    %5 = vector.load %arg3[%c0_3, %c0_4] : memref<128x128xbf16, #tpu.memory_space<vmem>>, vector<128x128xbf16>
    %cst = arith.constant dense<0.000000e+00> : vector<64x128xf32>
    %6 = tpu.matmul %4, %5, %cst {dimension_numbers = #tpu.dot_dimension_numbers<[1], [0], [0], [1], [0, 0, 1, 1], [], []>} : vector<64x128xbf16>, vector<128x128xbf16>, vector<64x128xf32> -> vector<64x128xf32>
    %c0_5 = arith.constant 0 : index
    %c0_6 = arith.constant 0 : index
    %7 = vector.load %arg5[%c0_5, %c0_6] : memref<1x128xf32, #tpu.memory_space<vmem>>, vector<1x128xf32>
    %8 = vector.broadcast %7 : vector<1x128xf32> to vector<64x128xf32>
    %9 = arith.addf %6, %8 : vector<64x128xf32>
    %10 = arith.truncf %9 : vector<64x128xf32> to vector<64x128xbf16>
    %11 = vector.shape_cast %10 : vector<64x128xbf16> to vector<4x16x128xbf16>
    %c0_7 = arith.constant 0 : index
    %c0_8 = arith.constant 0 : index
    %c0_9 = arith.constant 0 : index
    %12 = vector.load %arg11[%c0_7, %c0_8, %c0_9] : memref<4x16x128xbf16, #tpu.memory_space<vmem>>, vector<4x16x128xbf16>
    tpu.vector_store %arg11[%c0_7, %c0_8, %c0_9], %11 {strides = array<i32>} : memref<4x16x128xbf16, #tpu.memory_space<vmem>>, vector<4x16x128xbf16>,
    %c0_10 = arith.constant 0 : index
    %c0_11 = arith.constant 0 : index
    %13 = vector.load %arg4[%c0_10, %c0_11] : memref<32x128xbf16, #tpu.memory_space<vmem>>, vector<32x128xbf16>
    %c0_12 = arith.constant 0 : index
    %c0_13 = arith.constant 0 : index
    %14 = vector.load %arg9[%c0_12, %c0_13] : memref<16x32xf32, #tpu.memory_space<vmem>>, vector<16x32xf32>
    %c0_14 = arith.constant 0 : index
    %c0_15 = arith.constant 0 : index
    %15 = vector.load %arg10[%c0_14, %c0_15] : memref<16x32xf32, #tpu.memory_space<vmem>>, vector<16x32xf32>
    %c0_i32_16 = arith.constant 0 : i32
    %16 = arith.index_cast %c0_i32_16 : i32 to index
    %c0_17 = arith.constant 0 : index
    %c0_18 = arith.constant 0 : index
    %17 = vector.load %arg11[%16, %c0_17, %c0_18] : memref<4x16x128xbf16, #tpu.memory_space<vmem>>, vector<1x16x128xbf16>
    %18 = vector.shape_cast %17 : vector<1x16x128xbf16> to vector<16x128xbf16>
    %19 = arith.extf %18 : vector<16x128xbf16> to vector<16x128xf32>
    %20 = arith.truncf %14 : vector<16x32xf32> to vector<16x32xbf16>
    %cst_19 = arith.constant dense<0.000000e+00> : vector<16x128xf32>
    %21 = tpu.matmul %20, %13, %cst_19 {dimension_numbers = #tpu.dot_dimension_numbers<[1], [0], [0], [1], [0, 0, 1, 1], [], []>} : vector<16x32xbf16>, vector<32x128xbf16>, vector<16x128xf32> -> vector<16x128xf32>
    %22 = arith.addf %19, %21 : vector<16x128xf32>
    %23 = vector.extract_strided_slice %22 {offsets = [0, 0], sizes = [16, 32], strides = [1, 1]} : vector<16x128xf32> to vector<16x32xf32>
    %24 = arith.negf %23 : vector<16x32xf32>
    %25 = math.exp %24 : vector<16x32xf32>
    %cst_20 = arith.constant 1.000000e+00 : f32
    %26 = vector.broadcast %cst_20 : f32 to vector<16x32xf32>
    %27 = arith.addf %26, %25 : vector<16x32xf32>
    %28 = arith.divf %26, %27 : vector<16x32xf32>
    %29 = vector.extract_strided_slice %22 {offsets = [0, 32], sizes = [16, 32], strides = [1, 1]} : vector<16x128xf32> to vector<16x32xf32>
    %30 = arith.negf %29 : vector<16x32xf32>
    %31 = math.exp %30 : vector<16x32xf32>
    %cst_21 = arith.constant 1.000000e+00 : f32
    %32 = vector.broadcast %cst_21 : f32 to vector<16x32xf32>
    %33 = arith.addf %32, %31 : vector<16x32xf32>
    %34 = arith.divf %32, %33 : vector<16x32xf32>
    %35 = vector.extract_strided_slice %22 {offsets = [0, 64], sizes = [16, 32], strides = [1, 1]} : vector<16x128xf32> to vector<16x32xf32>
    %36 = math.tanh %35 : vector<16x32xf32>
    %37 = vector.extract_strided_slice %22 {offsets = [0, 96], sizes = [16, 32], strides = [1, 1]} : vector<16x128xf32> to vector<16x32xf32>
    %38 = arith.negf %37 : vector<16x32xf32>
    %39 = math.exp %38 : vector<16x32xf32>
    %cst_22 = arith.constant 1.000000e+00 : f32
    %40 = vector.broadcast %cst_22 : f32 to vector<16x32xf32>
    %41 = arith.addf %40, %39 : vector<16x32xf32>
    %42 = arith.divf %40, %41 : vector<16x32xf32>
    %43 = arith.mulf %34, %15 : vector<16x32xf32>
    %44 = arith.mulf %28, %36 : vector<16x32xf32>
    %45 = arith.addf %43, %44 : vector<16x32xf32>
    %46 = math.tanh %45 : vector<16x32xf32>
    %47 = arith.mulf %42, %46 : vector<16x32xf32>
    %c1_i32 = arith.constant 1 : i32
    %48 = arith.index_cast %c1_i32 : i32 to index
    %c0_23 = arith.constant 0 : index
    %c0_24 = arith.constant 0 : index
    %49 = vector.load %arg11[%48, %c0_23, %c0_24] : memref<4x16x128xbf16, #tpu.memory_space<vmem>>, vector<1x16x128xbf16>
    %50 = vector.shape_cast %49 : vector<1x16x128xbf16> to vector<16x128xbf16>
    %51 = arith.extf %50 : vector<16x128xbf16> to vector<16x128xf32>
    %52 = arith.truncf %47 : vector<16x32xf32> to vector<16x32xbf16>
    %cst_25 = arith.constant dense<0.000000e+00> : vector<16x128xf32>
    %53 = tpu.matmul %52, %13, %cst_25 {dimension_numbers = #tpu.dot_dimension_numbers<[1], [0], [0], [1], [0, 0, 1, 1], [], []>} : vector<16x32xbf16>, vector<32x128xbf16>, vector<16x128xf32> -> vector<16x128xf32>
    %54 = arith.addf %51, %53 : vector<16x128xf32>
    %55 = vector.extract_strided_slice %54 {offsets = [0, 0], sizes = [16, 32], strides = [1, 1]} : vector<16x128xf32> to vector<16x32xf32>
    %56 = arith.negf %55 : vector<16x32xf32>
    %57 = math.exp %56 : vector<16x32xf32>
    %cst_26 = arith.constant 1.000000e+00 : f32
    %58 = vector.broadcast %cst_26 : f32 to vector<16x32xf32>
    %59 = arith.addf %58, %57 : vector<16x32xf32>
    %60 = arith.divf %58, %59 : vector<16x32xf32>
    %61 = vector.extract_strided_slice %54 {offsets = [0, 32], sizes = [16, 32], strides = [1, 1]} : vector<16x128xf32> to vector<16x32xf32>
    %62 = arith.negf %61 : vector<16x32xf32>
    %63 = math.exp %62 : vector<16x32xf32>
    %cst_27 = arith.constant 1.000000e+00 : f32
    %64 = vector.broadcast %cst_27 : f32 to vector<16x32xf32>
    %65 = arith.addf %64, %63 : vector<16x32xf32>
    %66 = arith.divf %64, %65 : vector<16x32xf32>
    %67 = vector.extract_strided_slice %54 {offsets = [0, 64], sizes = [16, 32], strides = [1, 1]} : vector<16x128xf32> to vector<16x32xf32>
    %68 = math.tanh %67 : vector<16x32xf32>
    %69 = vector.extract_strided_slice %54 {offsets = [0, 96], sizes = [16, 32], strides = [1, 1]} : vector<16x128xf32> to vector<16x32xf32>
    %70 = arith.negf %69 : vector<16x32xf32>
    %71 = math.exp %70 : vector<16x32xf32>
    %cst_28 = arith.constant 1.000000e+00 : f32
    %72 = vector.broadcast %cst_28 : f32 to vector<16x32xf32>
    %73 = arith.addf %72, %71 : vector<16x32xf32>
    %74 = arith.divf %72, %73 : vector<16x32xf32>
    %75 = arith.mulf %66, %45 : vector<16x32xf32>
    %76 = arith.mulf %60, %68 : vector<16x32xf32>
    %77 = arith.addf %75, %76 : vector<16x32xf32>
    %78 = math.tanh %77 : vector<16x32xf32>
    %79 = arith.mulf %74, %78 : vector<16x32xf32>
    %c2_i32 = arith.constant 2 : i32
    %80 = arith.index_cast %c2_i32 : i32 to index
    %c0_29 = arith.constant 0 : index
    %c0_30 = arith.constant 0 : index
    %81 = vector.load %arg11[%80, %c0_29, %c0_30] : memref<4x16x128xbf16, #tpu.memory_space<vmem>>, vector<1x16x128xbf16>
    %82 = vector.shape_cast %81 : vector<1x16x128xbf16> to vector<16x128xbf16>
    %83 = arith.extf %82 : vector<16x128xbf16> to vector<16x128xf32>
    %84 = arith.truncf %79 : vector<16x32xf32> to vector<16x32xbf16>
    %cst_31 = arith.constant dense<0.000000e+00> : vector<16x128xf32>
    %85 = tpu.matmul %84, %13, %cst_31 {dimension_numbers = #tpu.dot_dimension_numbers<[1], [0], [0], [1], [0, 0, 1, 1], [], []>} : vector<16x32xbf16>, vector<32x128xbf16>, vector<16x128xf32> -> vector<16x128xf32>
    %86 = arith.addf %83, %85 : vector<16x128xf32>
    %87 = vector.extract_strided_slice %86 {offsets = [0, 0], sizes = [16, 32], strides = [1, 1]} : vector<16x128xf32> to vector<16x32xf32>
    %88 = arith.negf %87 : vector<16x32xf32>
    %89 = math.exp %88 : vector<16x32xf32>
    %cst_32 = arith.constant 1.000000e+00 : f32
    %90 = vector.broadcast %cst_32 : f32 to vector<16x32xf32>
    %91 = arith.addf %90, %89 : vector<16x32xf32>
    %92 = arith.divf %90, %91 : vector<16x32xf32>
    %93 = vector.extract_strided_slice %86 {offsets = [0, 32], sizes = [16, 32], strides = [1, 1]} : vector<16x128xf32> to vector<16x32xf32>
    %94 = arith.negf %93 : vector<16x32xf32>
    %95 = math.exp %94 : vector<16x32xf32>
    %cst_33 = arith.constant 1.000000e+00 : f32
    %96 = vector.broadcast %cst_33 : f32 to vector<16x32xf32>
    %97 = arith.addf %96, %95 : vector<16x32xf32>
    %98 = arith.divf %96, %97 : vector<16x32xf32>
    %99 = vector.extract_strided_slice %86 {offsets = [0, 64], sizes = [16, 32], strides = [1, 1]} : vector<16x128xf32> to vector<16x32xf32>
    %100 = math.tanh %99 : vector<16x32xf32>
    %101 = vector.extract_strided_slice %86 {offsets = [0, 96], sizes = [16, 32], strides = [1, 1]} : vector<16x128xf32> to vector<16x32xf32>
    %102 = arith.negf %101 : vector<16x32xf32>
    %103 = math.exp %102 : vector<16x32xf32>
    %cst_34 = arith.constant 1.000000e+00 : f32
    %104 = vector.broadcast %cst_34 : f32 to vector<16x32xf32>
    %105 = arith.addf %104, %103 : vector<16x32xf32>
    %106 = arith.divf %104, %105 : vector<16x32xf32>
    %107 = arith.mulf %98, %77 : vector<16x32xf32>
    %108 = arith.mulf %92, %100 : vector<16x32xf32>
    %109 = arith.addf %107, %108 : vector<16x32xf32>
    %110 = math.tanh %109 : vector<16x32xf32>
    %111 = arith.mulf %106, %110 : vector<16x32xf32>
    %c3_i32 = arith.constant 3 : i32
    %112 = arith.index_cast %c3_i32 : i32 to index
    %c0_35 = arith.constant 0 : index
    %c0_36 = arith.constant 0 : index
    %113 = vector.load %arg11[%112, %c0_35, %c0_36] : memref<4x16x128xbf16, #tpu.memory_space<vmem>>, vector<1x16x128xbf16>
    %114 = vector.shape_cast %113 : vector<1x16x128xbf16> to vector<16x128xbf16>
    %115 = arith.extf %114 : vector<16x128xbf16> to vector<16x128xf32>
    %116 = arith.truncf %111 : vector<16x32xf32> to vector<16x32xbf16>
    %cst_37 = arith.constant dense<0.000000e+00> : vector<16x128xf32>
    %117 = tpu.matmul %116, %13, %cst_37 {dimension_numbers = #tpu.dot_dimension_numbers<[1], [0], [0], [1], [0, 0, 1, 1], [], []>} : vector<16x32xbf16>, vector<32x128xbf16>, vector<16x128xf32> -> vector<16x128xf32>
    %118 = arith.addf %115, %117 : vector<16x128xf32>
    %119 = vector.extract_strided_slice %118 {offsets = [0, 0], sizes = [16, 32], strides = [1, 1]} : vector<16x128xf32> to vector<16x32xf32>
    %120 = arith.negf %119 : vector<16x32xf32>
    %121 = math.exp %120 : vector<16x32xf32>
    %cst_38 = arith.constant 1.000000e+00 : f32
    %122 = vector.broadcast %cst_38 : f32 to vector<16x32xf32>
    %123 = arith.addf %122, %121 : vector<16x32xf32>
    %124 = arith.divf %122, %123 : vector<16x32xf32>
    %125 = vector.extract_strided_slice %118 {offsets = [0, 32], sizes = [16, 32], strides = [1, 1]} : vector<16x128xf32> to vector<16x32xf32>
    %126 = arith.negf %125 : vector<16x32xf32>
    %127 = math.exp %126 : vector<16x32xf32>
    %cst_39 = arith.constant 1.000000e+00 : f32
    %128 = vector.broadcast %cst_39 : f32 to vector<16x32xf32>
    %129 = arith.addf %128, %127 : vector<16x32xf32>
    %130 = arith.divf %128, %129 : vector<16x32xf32>
    %131 = vector.extract_strided_slice %118 {offsets = [0, 64], sizes = [16, 32], strides = [1, 1]} : vector<16x128xf32> to vector<16x32xf32>
    %132 = math.tanh %131 : vector<16x32xf32>
    %133 = vector.extract_strided_slice %118 {offsets = [0, 96], sizes = [16, 32], strides = [1, 1]} : vector<16x128xf32> to vector<16x32xf32>
    %134 = arith.negf %133 : vector<16x32xf32>
    %135 = math.exp %134 : vector<16x32xf32>
    %cst_40 = arith.constant 1.000000e+00 : f32
    %136 = vector.broadcast %cst_40 : f32 to vector<16x32xf32>
    %137 = arith.addf %136, %135 : vector<16x32xf32>
    %138 = arith.divf %136, %137 : vector<16x32xf32>
    %139 = arith.mulf %130, %109 : vector<16x32xf32>
    %140 = arith.mulf %124, %132 : vector<16x32xf32>
    %141 = arith.addf %139, %140 : vector<16x32xf32>
    %142 = math.tanh %141 : vector<16x32xf32>
    %143 = arith.mulf %138, %142 : vector<16x32xf32>
    %c4_i32 = arith.constant 4 : i32
    %c0_41 = arith.constant 0 : index
    %c0_42 = arith.constant 0 : index
    %144 = vector.load %arg9[%c0_41, %c0_42] : memref<16x32xf32, #tpu.memory_space<vmem>>, vector<16x32xf32>
    tpu.vector_store %arg9[%c0_41, %c0_42], %143 {strides = array<i32>} : memref<16x32xf32, #tpu.memory_space<vmem>>, vector<16x32xf32>,
    %c0_43 = arith.constant 0 : index
    %c0_44 = arith.constant 0 : index
    %145 = vector.load %arg10[%c0_43, %c0_44] : memref<16x32xf32, #tpu.memory_space<vmem>>, vector<16x32xf32>
    tpu.vector_store %arg10[%c0_43, %c0_44], %141 {strides = array<i32>} : memref<16x32xf32, #tpu.memory_space<vmem>>, vector<16x32xf32>,
    %c1_i32_45 = arith.constant 1 : i32
    %146 = arith.cmpi eq, %arg1, %c1_i32_45 : i32
    %147 = arith.extui %146 : i1 to i32
    %c0_i32_46 = arith.constant 0 : i32
    %148 = arith.cmpi ne, %147, %c0_i32_46 : i32
    scf.if %148 {
      %149 = arith.truncf %143 : vector<16x32xf32> to vector<16x32xbf16>
      %c0_47 = arith.constant 0 : index
      %c0_48 = arith.constant 0 : index
      %150 = vector.load %arg6[%c0_47, %c0_48] : memref<32x128xbf16, #tpu.memory_space<vmem>>, vector<32x128xbf16>
      %cst_49 = arith.constant dense<0.000000e+00> : vector<16x128xf32>
      %151 = tpu.matmul %149, %150, %cst_49 {dimension_numbers = #tpu.dot_dimension_numbers<[1], [0], [0], [1], [0, 0, 1, 1], [], []>} : vector<16x32xbf16>, vector<32x128xbf16>, vector<16x128xf32> -> vector<16x128xf32>
      %c0_50 = arith.constant 0 : index
      %c0_51 = arith.constant 0 : index
      %152 = vector.load %arg7[%c0_50, %c0_51] : memref<1x128xf32, #tpu.memory_space<vmem>>, vector<1x128xf32>
      %153 = vector.broadcast %152 : vector<1x128xf32> to vector<16x128xf32>
      %154 = arith.addf %151, %153 : vector<16x128xf32>
      %c0_52 = arith.constant 0 : index
      %c0_53 = arith.constant 0 : index
      %155 = vector.load %arg8[%c0_52, %c0_53] : memref<16x128xf32, #tpu.memory_space<vmem>>, vector<16x128xf32>
      tpu.vector_store %arg8[%c0_52, %c0_53], %154 {strides = array<i32>} : memref<16x128xf32, #tpu.memory_space<vmem>>, vector<16x128xf32>,
    } else {
    }
    return
  }
  func.func @transform_0(%arg0: i32, %arg1: i32) -> (i32, i32, i32) {
    %c0_i32 = arith.constant 0 : i32
    %c0_i32_0 = arith.constant 0 : i32
    return %arg1, %arg0, %c0_i32 : i32, i32, i32
  }
  func.func @transform_1(%arg0: i32, %arg1: i32) -> (i32, i32) {
    %c0_i32 = arith.constant 0 : i32
    %c0_i32_0 = arith.constant 0 : i32
    %c0_i32_1 = arith.constant 0 : i32
    return %c0_i32, %c0_i32_0 : i32, i32
  }
  func.func @transform_2(%arg0: i32, %arg1: i32) -> (i32, i32) {
    %c0_i32 = arith.constant 0 : i32
    %c0_i32_0 = arith.constant 0 : i32
    %c0_i32_1 = arith.constant 0 : i32
    return %c0_i32, %c0_i32_0 : i32, i32
  }
  func.func @transform_3(%arg0: i32, %arg1: i32) -> (i32, i32) {
    %c0_i32 = arith.constant 0 : i32
    %c0_i32_0 = arith.constant 0 : i32
    %c0_i32_1 = arith.constant 0 : i32
    return %c0_i32, %c0_i32_0 : i32, i32
  }
  func.func @transform_4(%arg0: i32, %arg1: i32) -> (i32, i32) {
    %c0_i32 = arith.constant 0 : i32
    %c0_i32_0 = arith.constant 0 : i32
    %c0_i32_1 = arith.constant 0 : i32
    return %c0_i32, %c0_i32_0 : i32, i32
  }
  func.func @transform_5(%arg0: i32, %arg1: i32) -> (i32, i32) {
    %c0_i32 = arith.constant 0 : i32
    %c0_i32_0 = arith.constant 0 : i32
    %c0_i32_1 = arith.constant 0 : i32
    return %c0_i32, %c0_i32_0 : i32, i32
  }
  func.func @transform_6(%arg0: i32, %arg1: i32) -> (i32, i32) {
    %c0_i32 = arith.constant 0 : i32
    %c0_i32_0 = arith.constant 0 : i32
    return %arg0, %c0_i32 : i32, i32
  }
}

</mosaic_0001>

<bundles_post_ra>
// kernel: tpu_custom_call.1
= control target key start
LH: loop header
LB: loop body
LE: loop exit
PB: predicated region body
PF: predicated region fallthrough
CT: control target
= control target key end

     0   :  { %11 = vsyncpa [#allocation6], 0  ;;  %s2104_s0 = inlined_call_operand.hbm [shape: bf16[8,16,128], index: 0, kind: input, shape index: {}]   ;;  %s2105_s1 = inlined_call_operand.hbm [shape: bf16[128,128], index: 1, kind: input, shape index: {}]   ;;  %s2106_s2 = inlined_call_operand.hbm [shape: bf16[32,128], index: 2, kind: input, shape index: {}]   ;;  %s2107_s3 = inlined_call_operand.vmem [shape: f32[1,128], index: 3, kind: input, shape index: {}]   ;;  %s2108_s4 = inlined_call_operand.hbm [shape: bf16[32,128], index: 4, kind: input, shape index: {}]   ;;  %s2109_s5 = inlined_call_operand.vmem [shape: f32[1,128], index: 5, kind: input, shape index: {}]   ;;  %s2110_s6 = inlined_call_operand.hbm [shape: f32[16,128], index: 6, kind: output, shape index: {}]  }
   0x1   :  { %13 = vsyncpa [#allocation6 + $0x1], 0 }
   0x2   :  { %14 = vsyncpa [#allocation9], 0 }
   0x3   :  { %15 = vsyncpa [#allocation12], 0 }
   0x4   :  { %16 = vsyncpa [#allocation7], 0  ;;  %s1736_s21 = smov 0   ;;  %s1738_s22 = smov 0  }
   0x5   :  { %s1740_s23 = smov 0   ;;  %s1742_s24 = smov 0  }
   0x6   :  { %s1744_s25 = smov 0   ;;  %s1746_s26 = smov 0  }
   0x7 LB: > { %s2113_s27 = sadd.s32 4294967295, %s1681_s26   ;;  %p56_p0 = scmp.ne.s32.totalorder %s1665_s22, %s1661_s21  ;;  %s1681_s26 = sphi %s1746_s26, %s22_s26   ;;  %s1677_s25 = sphi %s1744_s25, %s2132_s25   ;;  %s1673_s24 = sphi %s1742_s24, %s2131_s24   ;;  %s1669_s23 = sphi %s1740_s23, %s2130_s23   ;;  %s1665_s22 = sphi %s1738_s22, %s2129_s22   ;;  %s1661_s21 = sphi %s1736_s21, %s2128_s21  }
   0x8   : > { %p1768_p1 = scmp.eq.s32.totalorder %s2113_s27, 0  ;;  %p1149_p2 = scmp.ge.s32.totalorder %s1681_s26, 1 }
   0x9   : > { %p198_p3 = scmp.lt.s32.totalorder %s1681_s26, 3  ;;  %s1683_s7 = smov [#allocation8]  }
   0xa   : > { %s2116_s28 = scalar_select %p1768_p1, 1, 0 }
   0xb   : > { %p1776_p4 = por %p1768_p1, %p56_p0  ;;  %p1780_p5 = pnand %p1149_p2, %p198_p3 }
   0xc   : > { %s210_s8 = sshll.u32 %s1683_s7, 4  ;;  %s1684_s10 = smov [#allocation10]   ;;  %s1784_s8 = int_to_ptr.vmem [resolvable:$true] %s210_s8 }
   0xd   : > { %s2117_s29 = scalar_select %p1776_p4, 1, 0 }
   0xe   : > { %s2118_s30 = scalar_select %p1780_p5, 1, 0 }
   0xf   : > { %p1311_p6 = pneg %p1780_p5  ;;  %s223_s11 = sshll.u32 %s1684_s10, 4  ;;  %s1794_s11 = int_to_ptr.vmem [resolvable:$true] %s223_s11 }
  0x10   : > { %s1685_s12 = smov [#allocation11]   ;;  %s1479_s16 = scalar_lea.hbm %s2105_s1, 1024 }
  0x11   : > { %p1790_p7 = pnand %p1311_p6, %p1768_p1  ;;  %s1796_s13 = sshll.u32 %s1685_s12, 4  ;;  %s240_s13 = int_to_ptr.vmem [resolvable:$true] %s1796_s13 }
  0x12   : > { %p1480_p8 = scmp.ne.s32.totalorder %s2105_s1, %s1479_s16  ;;  %p1486_p12 = scmp.lt.u32.totalorder %s1479_s16, %s2105_s1 }
  0x13   : > { %p1806_p9 = pneg %p1790_p7 }
  0x15   : > { %p1482_p10 = pnand %p1806_p9, %p1480_p8 }
  0x17   : > { %p1483_p11 = pneg %p1482_p10 }
  0x19   : > { %p1488_p13 = pnand %p1486_p12, %p1483_p11 }
  0x1b   : > { %1491 = shalt.err (!%p1488_p13)
}
  0x1c   : > { %s1492_s7 = scalar_lea.vmem %s1784_s8, 1024  ;;  %p1500_p6 = scmp.lt.s32.totalorder %s1784_s8, %s1784_s8 }
  0x1d   : > { %p1493_p0 = scmp.ne.s32.totalorder %s1784_s8, %s1492_s7  ;;  %p1501_p1 = scmp.lt.s32.totalorder %s1492_s7, %s1492_s7 }
  0x1f   : > { %p1495_p2 = pnand %p1493_p0, %p1806_p9  ;;  %p1502_p8 = por %p1501_p1, %p1500_p6 }
  0x21   : > { %p1496_p3 = pneg %p1495_p2 }
  0x23   : > { %p1503_p10 = pnand %p1502_p8, %p1496_p3 }
  0x25   : > { %1506 = shalt.err (!%p1503_p10)
}
  0x26   : > { %s1686_s10 = smov 64   ;;  %s1687_s12 = smov 4  }
  0x27   : > { %1314 = dma.hbm_to_vmem [thread:$0]  (!%p1790_p7), %s2105_s1, 1024, %s1784_s8, [#allocation9], %s1686_s10, %s1686_s10, %s1687_s12  }
  0x28   : > { %s1507_s18 = scalar_lea.hbm %s2106_s2, 256 }
  0x29   : > { %p1508_p1 = scmp.ne.s32.totalorder %s2106_s2, %s1507_s18  ;;  %p1514_p13 = scmp.lt.u32.totalorder %s1507_s18, %s2106_s2 }
  0x2b   : > { %p1510_p11 = pnand %p1508_p1, %p1806_p9 }
  0x2d   : > { %p1511_p12 = pneg %p1510_p11 }
  0x2f   : > { %p1516_p0 = pnand %p1514_p13, %p1511_p12 }
  0x31   : > { %1519 = shalt.err (!%p1516_p0)
}
  0x32   : > { %s1520_s8 = scalar_lea.vmem %s1794_s11, 256  ;;  %p1528_p8 = scmp.lt.s32.totalorder %s1794_s11, %s1794_s11 }
  0x33   : > { %p1521_p2 = scmp.ne.s32.totalorder %s1794_s11, %s1520_s8  ;;  %p1529_p10 = scmp.lt.s32.totalorder %s1520_s8, %s1520_s8 }
  0x35   : > { %p1523_p3 = pnand %p1521_p2, %p1806_p9  ;;  %p1530_p1 = por %p1529_p10, %p1528_p8 }
  0x37   : > { %p1524_p6 = pneg %p1523_p3 }
  0x39   : > { %p1531_p11 = pnand %p1530_p1, %p1524_p6 }
  0x3b   : > { %1534 = shalt.err (!%p1531_p11)
}
  0x3c   : > { %1317 = dma.hbm_to_vmem [thread:$0]  (!%p1790_p7), %s2106_s2, 256, %s1794_s11, [#allocation9], %s1686_s10, %s1686_s10, %s1687_s12  }
  0x3d   : > { %s1535_s17 = scalar_lea.hbm %s2108_s4, 256 }
  0x3e   : > { %p1536_p12 = scmp.ne.s32.totalorder %s2108_s4, %s1535_s17  ;;  %p1542_p2 = scmp.lt.u32.totalorder %s1535_s17, %s2108_s4 }
  0x40   : > { %p1538_p13 = pnand %p1536_p12, %p1806_p9 }
  0x42   : > { %p1539_p0 = pneg %p1538_p13 }
  0x44   : > { %p1544_p3 = pnand %p1542_p2, %p1539_p0 }
  0x46   : > { %1547 = shalt.err (!%p1544_p3)
}
  0x47   : > { %s1548_s8 = scalar_lea.vmem %s240_s13, 256  ;;  %p1556_p1 = scmp.lt.s32.totalorder %s240_s13, %s240_s13 }
  0x48   : > { %p1549_p6 = scmp.ne.s32.totalorder %s240_s13, %s1548_s8  ;;  %p1557_p11 = scmp.lt.s32.totalorder %s1548_s8, %s1548_s8 }
  0x4a   : > { %p1551_p8 = pnand %p1549_p6, %p1806_p9  ;;  %p1558_p4 = por %p1557_p11, %p1556_p1 }
  0x4c   : > { %p1552_p10 = pneg %p1551_p8 }
  0x4e   : > { %p1559_p5 = pnand %p1558_p4, %p1552_p10 }
  0x50   : > { %1562 = shalt.err (!%p1559_p5)
}
  0x51   : > { %1320 = dma.hbm_to_vmem [thread:$0]  (!%p1790_p7), %s2108_s4, 256, %s240_s13, [#allocation12], %s1686_s10, %s1686_s10, %s1687_s12  }
  0x52   : > { %s31_s19 = sadd.s32 1, %s1677_s25  ;;  %p50_p4 = scmp.ne.s32.totalorder %s1669_s23, %s1665_s22 }
  0x53   : > { %p32_p5 = scmp.ge.s32.totalorder %s31_s19, 2  ;;  %p51_p9 = scmp.eq.s32.totalorder %s1681_s26, 0 }
  0x54   : > { %s43_s9 = sadd.s32 1, %s1669_s23  ;;  %s256_s14 = sand.u32 1, %s1669_s23  }
  0x55   : > { %s2134_s19 = smov (%p32_p5, %s31_s19), 0  ;;  %p52_p12 = por %p51_p9, %p50_p4 }
  0x56   : > { %p1328_p13 = scmp.lt.s32.totalorder %s1681_s26, 2  ;;  %s38_s15 = ssub.s32 %s1677_s25, %s2134_s19 }
  0x57   : > { %s1154_s16 = sshll.u32 %s256_s14, 5  ;;  %p41_p0 = scmp.eq.s32.totalorder %s38_s15, 0 }
  0x58   : > { %s1201_s17 = sshll.u32 %s1677_s25, 9  ;;  %s260_s18 = scalar_lea.vmem [#allocation5], %s1154_s16 }
  0x59   : > { %s270_s20 = sshll.u32 %s260_s18, 4  ;;  %s1896_s8 = scalar_lea.hbm %s2104_s0, %s1201_s17  ;;  %s1898_s20 = int_to_ptr.vmem [resolvable:$true] %s270_s20 }
  0x5a   : > { %s1891_s21 = scalar_select %p41_p0, %s1669_s23, %s43_s9  }
  0x5b   : > { %p1900_p7 = pnand %p1328_p13, %p52_p12  ;;  %s1904_s27 = scalar_lea.sflag [#allocation6], %s256_s14 }
  0x5c   : > { %s1563_s9 = scalar_lea.hbm %s1896_s8, 512  ;;  %s1568_s17 = scalar_lea.hbm %s2104_s0, 1024 }
  0x5d   : > { %p1564_p2 = scmp.ne.s32.totalorder %s1896_s8, %s1563_s9  ;;  %p1565_p3 = pneg %p1900_p7 }
  0x5e   : > { %p1569_p10 = scmp.lt.u32.totalorder %s1896_s8, %s2104_s0  ;;  %p1570_p1 = scmp.lt.u32.totalorder %s1568_s17, %s1563_s9 }
  0x5f   : > { %p1566_p6 = pnand %p1565_p3, %p1564_p2  ;;  %p1572_p4 = scmp.lt.u32.totalorder %s1563_s9, %s1896_s8 }
  0x60   : > { %p1571_p11 = por %p1570_p1, %p1569_p10 }
  0x61   : > { %p1567_p8 = pneg %p1566_p6 }
  0x62   : > { %p1573_p5 = por %p1572_p4, %p1571_p11 }
  0x64   : > { %p1574_p9 = pnand %p1573_p5, %p1567_p8 }
  0x66   : > { %1577 = shalt.err (!%p1574_p9)
}
  0x67   : > { %s1578_s14 = scalar_lea.vmem %s1898_s20, 512  ;;  %s1688_s7 = smov [#allocation5]  }
  0x68   : > { %p1579_p12 = scmp.ne.s32.totalorder %s1898_s20, %s1578_s14  ;;  %s1583_s15 = sshll.u32 %s1688_s7, 4  ;;  %s1584_s15 = int_to_ptr.vmem [resolvable:$false] %s1583_s15 }
  0x69   : > { %s1585_s16 = scalar_lea.vmem %s1584_s15, 1024  ;;  %p1586_p2 = scmp.lt.s32.totalorder %s1898_s20, %s1584_s15 }
  0x6a   : > { %p1581_p13 = pnand %p1579_p12, %p1565_p3  ;;  %p1587_p6 = scmp.lt.s32.totalorder %s1585_s16, %s1578_s14 }
  0x6c   : > { %p1582_p0 = pneg %p1581_p13  ;;  %p1588_p10 = por %p1587_p6, %p1586_p2 }
  0x6e   : > { %p1589_p1 = pnand %p1588_p10, %p1582_p0 }
  0x70   : > { %1592 = shalt.err (!%p1589_p1)
}
  0x71   : > { %1324 = dma.hbm_to_vmem [thread:$0]  (!%p1900_p7), %s1896_s8, 512, %s1898_s20, %s1904_s27, %s1686_s10, %s1686_s10, %s1687_s12  }
  0x72   : > { %p2122_p3 = scmp.ne.s32.totalorder %s2118_s30, 0 }
  0x73   : > { %s284_s9 = sand.u32 (!%p2122_p3), 1, %s1665_s22   ;;  %p2123_p8 = scmp.ne.s32.totalorder (!%p2122_p3), %s2117_s29, 0 }
  0x74   : > { %282 = sbr.rel (%p2122_p3) target bundleno = 3255 (0xcb7), region = 44  ;;  %s1159_s17 = sshll.u32 (!%p2122_p3), %s284_s9, 5 }
  0x75   : > { %s285_s18 = scalar_lea.sflag (!%p2122_p3), [#allocation6], %s284_s9  ;;  %s1938_s13 = scalar_lea.vmem (!%p2122_p3), [#allocation5], %s1159_s17 }
  0x7b   : > { %1644 = dma.done.wait (%p2123_p8), %s285_s18, 512  }
  0x7c   : > { %1646 = vsyncadd (%p2123_p8), %s285_s18, 4294966784  ;;  %p2124_p11 = scmp.ne.s32.totalorder %s2116_s28, 0 }
  0x7e   : > { %1648 = dma.done.wait (%p2124_p11), [#allocation9], 1280  }
  0x7f   : > { %1650 = vsyncadd (%p2124_p11), [#allocation9], 4294966016 }
  0x80   : > { %1652 = dma.done.wait (%p2124_p11), [#allocation12], 256  }
  0x81   : > { %1654 = vsyncadd (%p2124_p11), [#allocation12], 4294967040  ;;  %p1163_p7 = scmp.ne.s32.totalorder %s1673_s24, 0 }
  0x82   : > { %vm332_vm0 = vcmask (!%p1163_p7), 261120   ;;  %v1689_v0 = vmov (!%p1163_p7), 0.0  }
  0x83   : > { %331 = sbr.rel (%p1163_p7) target bundleno = 138 (0x8a), region = 64  ;;  %333 = vst.msk [vmem:[#allocation2] sm:$0xff] (!%p1163_p7), %vm332_vm0, %v1689_v0  ;;  %334 = vst.msk [vmem:[#allocation2 + $0x8] sm:$0xff] (!%p1163_p7), %vm332_vm0, %v1689_v0 }
  0x84   : > { %335 = vst.msk [vmem:[#allocation3] sm:$0xff] (!%p1163_p7), %vm332_vm0, %v1689_v0  ;;  %336 = vst.msk [vmem:[#allocation3 + $0x8] sm:$0xff] (!%p1163_p7), %vm332_vm0, %v1689_v0 }
  0x8a PF: > { %v1399_v1 = vld [vmem:[#allocation8] sm:$0xff]   ;;  %v1400_v2 = vld [vmem:[#allocation8 + $0x8] sm:$0xff]   ;;  %v1690_v3 = vmov 0.0   ;;  %vm1691_vm1 = vmmov 0   ;;  %v1401_v4 = vld [vmem:[#allocation8 + $0x10] sm:$0xff]   ;;  %s1692_s28 = smov 32  }
  0x8b   : > { %1253 = vmatprep.subr.bf16.mxu1 %v1690_v3  ;;  %1229 = vmatprep.subr.bf16.mxu0 %v1399_v1  ;;  %v1402_v5 = vld [vmem:[#allocation8 + $0x18] sm:$0xff]   ;;  %v1407_v6 = vld [vmem:[%s1938_s13] sm:$0xff]   ;;  %v1960_v9 = vld [vmem:[#allocation10 + $0x8] sm:$0xff]   ;;  %vm537_vm2 = vcmask 261120   ;;  %s1693_s10 = smov 64   ;;  %s1694_s12 = smov 96  }
  0x8c   : > { %1257 = vmatprep.mubr.msk.bf16.mxu1 %vm1691_vm1, %v1690_v3  ;;  %1230 = vmatpush3.bf16.msra.mxu0 %v1399_v1  ;;  %v1957_v7 = vld [vmem:[#allocation10] sm:$0xff]   ;;  %v518_v11 = vld [vmem:[#allocation2 + $0x8] sm:$0xff]  ;;  %v519_v12 = vld [vmem:[#allocation3] sm:$0xff]  ;;  %p1191_p4 = scmp.ne.s32.totalorder %s1673_s24, 1 }
  0x8d   : > { %1231 = vmatprep.subr.bf16.mxu0 %v1400_v2  ;;  %v1403_v8 = vld [vmem:[#allocation8 + $0x20] sm:$0xff]   ;;  %1245 = vmatprep.mubr.bf16.mxu0 %v1407_v6  ;;  %v520_v14 = vld [vmem:[#allocation3 + $0x8] sm:$0xff]  ;;  %v1404_v15 = vld [vmem:[#allocation8 + $0x28] sm:$0xff]   ;;  %s1696_s20 = smov (!%p1191_p4), 32   ;;  %vm1697_vm3 = vmmov (!%p1191_p4), 0  }
  0x8e   : > { %1254 = vmatpush3.bf16.msra.mxu1 %v1957_v7  ;;  %v517_v10 = vld [vmem:[#allocation2] sm:$0xff]  ;;  %600 = vrot.lane.b32.xlu1 %v519_v12, %s1692_s28  ;;  %v1405_v16 = vld [vmem:[#allocation8 + $0x30] sm:$0xff]   ;;  %v1406_v17 = vld [vmem:[#allocation8 + $0x38] sm:$0xff]  }
  0x8f   : > { %1255 = vmatprep.subr.bf16.mxu1 %v1690_v3  ;;  %v524_v13 = vpack.c.bf16 %v518_v11, %v517_v10  ;;  %v1409_v18 = vld [vmem:[%s1938_s13 + $0x8] sm:$0xff]   ;;  %v1978_v24 = vld [vmem:[%s2107_s3] ss:$0 sm:$0xff] }
  0x90   : > { %1232 = vmatpush3.bf16.msra.mxu0 %v1400_v2 }
  0x91   : > { %1233 = vmatprep.subr.bf16.mxu0 %v1401_v4 }
  0x92   : > { %1256 = vmatpush3.bf16.msra.mxu1 %v1960_v9  ;;  %602 = vrot.lane.b32.xlu1 %v520_v14, %s1692_s28 }
  0x93   : > { %1261 = vmatprep.subr.bf16.mxu1 %v1690_v3 }
  0x94   : > { %1234 = vmatpush3.bf16.msra.mxu0 %v1401_v4 }
  0x95   : > { %1235 = vmatprep.subr.bf16.mxu0 %v1402_v5  ;;  %1258 = vmatmul.mubr.msk.bf16.vlgmr.msra.gmra.mrb[0].mxu1 %vm537_vm2, %v524_v13 }
  0x96   : > { %1262 = vmatpush3.bf16.msra.mxu1 %v1957_v7  ;;  %1265 = vmatprep.mubr.msk.bf16.mxu1 %vm1691_vm1, %v1690_v3 }
  0x97   : > { %1263 = vmatprep.subr.bf16.mxu1 %v1690_v3 }
  0x98   : > { %1236 = vmatpush3.bf16.msra.mxu0 %v1402_v5 }
  0x99   : > { %1237 = vmatprep.subr.bf16.mxu0 %v1403_v8 }
  0x9a   : > { %1264 = vmatpush3.bf16.msra.mxu1 %v1960_v9 }
  0x9b   : > { %1269 = vmatprep.subr.bf16.mxu1 %v1690_v3 }
  0x9c   : > { %1238 = vmatpush3.bf16.msra.mxu0 %v1403_v8 }
  0x9d   : > { %1239 = vmatprep.subr.bf16.mxu0 %v1404_v15 }
  0xa0   : > { %1240 = vmatpush3.bf16.msra.mxu0 %v1404_v15 }
  0xa1   : > { %1241 = vmatprep.subr.bf16.mxu0 %v1405_v16 }
  0xa4   : > { %1242 = vmatpush3.bf16.msra.mxu0 %v1405_v16 }
  0xa5   : > { %1243 = vmatprep.subr.bf16.mxu0 %v1406_v17 }
  0xa8   : > { %1244 = vmatpush3.bf16.msra.mxu0 %v1406_v17 }
  0xab   : > { %1246 = vmatmul.mubr.bf16.vlgmr.msra.gmra.mrb[0].mxu0 %v1409_v18 }
 0x100   : > { %v601_v52 = vpop.permute.xlu1 %600 }
 0x104   : > { %v603_v54 = vpop.permute.xlu1 %602 }
 0x168   : > { %v575_v19 = vpop.f32.mrb[0].mxu1 }
 0x169   : > { %v1259_v20 = vpop.f32.mrb[1].mxu1 }
 0x16a   : > { %v578_v21 = vpop.f32.mrb[2].mxu1 }
 0x16b   : > { %v1260_v22 = vpop.f32.mrb[3].mxu1 }
 0x17e   : > { %v1247_v23 = vpop.f32.mrb[0].mxu0 }
 0x17f   : > { %v474_v25 = vpop.f32.mrb[1].mxu0  ;;  %v483_v27 = vadd.f32 %v1247_v23, %v1978_v24 }
 0x180   : > { %v1248_v26 = vpop.f32.mrb[2].mxu0  ;;  %v475_v30 = vadd.f32 %v1978_v24, %v474_v25 }
 0x181   : > { %v486_v28 = vadd.f32 %v1248_v26, %v1978_v24  ;;  %v477_v29 = vpop.f32.mrb[3].mxu0 }
 0x182   : > { %v478_v31 = vadd.f32 %v1978_v24, %v477_v29 }
 0x183   : > { %v1984_v32 = vpack.c.bf16 %v486_v28, %v483_v27 }
 0x184   : > { %v505_v33 = vpack.c.bf16 %v478_v31, %v475_v30 }
 0x185   : > { %v642_v5 = vunpack.c.l.bf16 %v1984_v32  ;;  %v643_v11 = vunpack.c.h.bf16 %v1984_v32 }
 0x186   : > { %v522_v34 = vunpack.c.l.bf16 %v505_v33  ;;  %v523_v35 = vunpack.c.h.bf16 %v505_v33 }
 0x188   : > { %v582_v36 = vadd.f32 %v575_v19, %v522_v34  ;;  %v583_v37 = vadd.f32 %v578_v21, %v523_v35 }
 0x18a   : > { %1413 = vtanh.f32 %v582_v36  ;;  %v1180_v40 = vmul.f32 -1.442695, %v582_v36  ;;  %v1181_v41 = vmul.f32 -1.442695, %v583_v37  ;;  %v1411_v36 = vld [vmem:[%s1938_s13 + $0x10] sm:$0xff]  }
 0x18b   : > { %1415 = vtanh.f32 %v583_v37  ;;  %v1412_v37 = vld [vmem:[%s1938_s13 + $0x18] sm:$0xff]   ;;  %1249 = vmatprep.mubr.bf16.mxu0 %v1411_v36 }
 0x18c   : > { %1417 = vpow2.f32 %v1180_v40  ;;  %1250 = vmatmul.mubr.bf16.gmra.mrb[4].mxu0 %v1412_v37 }
 0x18d   : > { %1419 = vpow2.f32 %v1181_v41 }
 0x194   : > { %v1414_v38 = vpop.eup %1413 }
 0x195   : > { %610 = vrot.lane.b32.xlu0 %v1414_v38, %s1693_s10  ;;  %v1416_v39 = vpop.eup %1415 }
 0x196   : > { %v1418_v42 = vpop.eup %1417 }
 0x197   : > { %v590_v43 = vadd.f32 1.0, %v1418_v42  ;;  %v1420_v44 = vpop.eup %1419 }
 0x198   : > { %v591_v45 = vadd.f32 1.0, %v1420_v44 }
 0x199   : > { %612 = vrot.lane.b32.xlu0 %v1416_v39, %s1693_s10  ;;  %1421 = vrcp.f32 %v590_v43 }
 0x19a   : > { %1423 = vrcp.f32 %v591_v45 }
 0x1a3   : > { %v1422_v46 = vpop.eup %1421 }
 0x1a4   : > { %v1424_v49 = vpop.eup %1423  ;;  %v606_v53 = vmul.f32 %v1422_v46, %v601_v52 }
 0x1a5   : > { %v607_v57 = vmul.f32 %v1424_v49, %v603_v54 }
 0x207   : > { %v611_v47 = vpop.permute.xlu0 %610 }
 0x208   : > { %v616_v48 = vmul.f32 %v1422_v46, %v611_v47 }
 0x20a   : > { %620 = vrot.lane.b32.xlu0 %v616_v48, %s1692_s28 }
 0x20b   : > { %v613_v50 = vpop.permute.xlu0 %612 }
 0x20c   : > { %v617_v51 = vmul.f32 %v1424_v49, %v613_v50 }
 0x20e   : > { %622 = vrot.lane.b32.xlu1 %v617_v51, %s1692_s28 }
 0x25f   : > { %v1251_v45 = vpop.f32.mrb[4].mxu0 }
 0x260   : > { %v490_v47 = vpop.f32.mrb[5].mxu0 }
 0x261   : > { %v491_v48 = vadd.f32 %v1978_v24, %v490_v47 }
 0x27c   : > { %v621_v55 = vpop.permute.xlu0 %620 }
 0x27d   : > { %v626_v56 = vadd.f32 %v621_v55, %v606_v53 }
 0x27f   : > { %1425 = vtanh.f32 %v626_v56 }
 0x280   : > { %v623_v58 = vpop.permute.xlu1 %622 }
 0x281   : > { %v627_v59 = vadd.f32 %v623_v58, %v607_v57 }
 0x283   : > { %1427 = vtanh.f32 %v627_v59 }
 0x289   : > { %v1426_v60 = vpop.eup %1425 }
 0x28a   : > { %632 = vrot.lane.b32.xlu0 %v1426_v60, %s1693_s10 }
 0x28d   : > { %v1428_v61 = vpop.eup %1427 }
 0x28e   : > { %634 = vrot.lane.b32.xlu1 %v1428_v61, %s1693_s10 }
 0x2fc   : > { %v633_v62 = vpop.permute.xlu0 %632 }
 0x2fd   : > { %v638_v0 = vmul.f32 %v1422_v46, %v633_v62  ;;  %v499_v46 = vadd.f32 %v1251_v45, %v1978_v24 }
 0x300   : > { %v635_v63 = vpop.permute.xlu1 %634 }
 0x301   : > { %v639_v1 = vmul.f32 %v1424_v49, %v635_v63  ;;  %v1252_v49 = vpop.f32.mrb[6].mxu0 }
 0x302   : > { %v502_v50 = vadd.f32 %v1252_v49, %v1978_v24  ;;  %v493_v51 = vpop.f32.mrb[7].mxu0 }
 0x303   : > { %v644_v2 = vpack.c.bf16 %v639_v1, %v638_v0  ;;  %v494_v52 = vadd.f32 %v1978_v24, %v493_v51 }
 0x304   : > { %v2021_v53 = vpack.c.bf16 %v502_v50, %v499_v46 }
 0x305   : > { %646 = vrot.lane.b32.xlu0 %v644_v2, %s1692_s28  ;;  %v507_v54 = vpack.c.bf16 %v494_v52, %v491_v48 }
 0x307   : > { %v745_v24 = vunpack.c.h.bf16 %v507_v54 }
 0x377   : > { %v647_v4 = vpop.permute.xlu0 %646 }
 0x378   : > { %1266 = vmatmul.mubr.msk.bf16.vlgmr.msra.gmra.mrb[4].mxu1 %vm537_vm2, %v647_v4 }
 0x379   : > { %1270 = vmatpush3.bf16.msra.mxu1 %v1957_v7  ;;  %1273 = vmatprep.mubr.msk.bf16.mxu1 %vm1691_vm1, %v1690_v3 }
 0x37a   : > { %1271 = vmatprep.subr.bf16.mxu1 %v1690_v3 }
 0x37d   : > { %1272 = vmatpush3.bf16.msra.mxu1 %v1960_v9 }
 0x37e   : > { %1277 = vmatprep.subr.bf16.mxu1 %v1690_v3 }
 0x44b   : > { %v685_v6 = vpop.f32.mrb[4].mxu1 }
 0x44c   : > { %v692_v8 = vadd.f32 %v685_v6, %v642_v5  ;;  %v1267_v10 = vpop.f32.mrb[5].mxu1 }
 0x44d   : > { %v688_v12 = vpop.f32.mrb[6].mxu1 }
 0x44e   : > { %1429 = vtanh.f32 %v692_v8  ;;  %v693_v13 = vadd.f32 %v688_v12, %v643_v11  ;;  %v1268_v14 = vpop.f32.mrb[7].mxu1  ;;  %v1183_v17 = vmul.f32 -1.442695, %v692_v8 }
 0x450   : > { %1431 = vtanh.f32 %v693_v13  ;;  %v1184_v18 = vmul.f32 -1.442695, %v693_v13 }
 0x451   : > { %1433 = vpow2.f32 %v1183_v17 }
 0x452   : > { %1435 = vpow2.f32 %v1184_v18 }
 0x458   : > { %v1430_v15 = vpop.eup %1429 }
 0x459   : > { %712 = vrot.lane.b32.xlu1 %v1430_v15, %s1693_s10 }
 0x45a   : > { %v1432_v16 = vpop.eup %1431 }
 0x45b   : > { %714 = vrot.lane.b32.xlu0 %v1432_v16, %s1693_s10  ;;  %v1434_v19 = vpop.eup %1433 }
 0x45c   : > { %v1436_v20 = vpop.eup %1435  ;;  %v700_v21 = vadd.f32 1.0, %v1434_v19 }
 0x45d   : > { %v701_v22 = vadd.f32 1.0, %v1436_v20 }
 0x45e   : > { %1437 = vrcp.f32 %v700_v21 }
 0x45f   : > { %1439 = vrcp.f32 %v701_v22 }
 0x468   : > { %v1438_v23 = vpop.eup %1437 }
 0x469   : > { %v1440_v27 = vpop.eup %1439  ;;  %v708_v30 = vmul.f32 %v1438_v23, %v626_v56  ;;  %v744_v56 = vunpack.c.l.bf16 %v507_v54 }
 0x46a   : > { %v709_v33 = vmul.f32 %v1440_v27, %v627_v59 }
 0x4cb   : > { %v713_v25 = vpop.permute.xlu1 %712 }
 0x4cc   : > { %v718_v26 = vmul.f32 %v1438_v23, %v713_v25 }
 0x4cd   : > { %v715_v28 = vpop.permute.xlu0 %714 }
 0x4ce   : > { %722 = vrot.lane.b32.xlu1 %v718_v26, %s1692_s28  ;;  %v719_v29 = vmul.f32 %v1440_v27, %v715_v28  ;;  %v846_v28 = vunpack.c.l.bf16 %v2021_v53 }
 0x4d0   : > { %724 = vrot.lane.b32.xlu0 %v719_v29, %s1692_s28 }
 0x540   : > { %v723_v31 = vpop.permute.xlu1 %722 }
 0x541   : > { %v2006_v32 = vadd.f32 %v723_v31, %v708_v30 }
 0x542   : > { %v725_v34 = vpop.permute.xlu0 %724 }
 0x543   : > { %1441 = vtanh.f32 %v2006_v32  ;;  %v2009_v35 = vadd.f32 %v725_v34, %v709_v33 }
 0x545   : > { %1443 = vtanh.f32 %v2009_v35 }
 0x54d   : > { %v1442_v38 = vpop.eup %1441 }
 0x54e   : > { %734 = vrot.lane.b32.xlu1 %v1442_v38, %s1693_s10 }
 0x54f   : > { %v1444_v39 = vpop.eup %1443 }
 0x550   : > { %736 = vrot.lane.b32.xlu0 %v1444_v39, %s1693_s10 }
 0x5c0   : > { %v735_v40 = vpop.permute.xlu1 %734 }
 0x5c1   : > { %v740_v42 = vmul.f32 %v1438_v23, %v735_v40 }
 0x5c2   : > { %v737_v41 = vpop.permute.xlu0 %736 }
 0x5c3   : > { %v741_v43 = vmul.f32 %v1440_v27, %v737_v41 }
 0x5c5   : > { %v746_v44 = vpack.c.bf16 %v741_v43, %v740_v42 }
 0x5c7   : > { %748 = vrot.lane.b32.xlu1 %v746_v44, %s1692_s28 }
 0x639   : > { %v749_v55 = vpop.permute.xlu1 %748 }
 0x63a   : > { %1274 = vmatmul.mubr.msk.bf16.vlgmr.msra.gmra.mrb[8].mxu1 %vm537_vm2, %v749_v55 }
 0x63b   : > { %1278 = vmatpush3.bf16.msra.mxu1 %v1957_v7  ;;  %1281 = vmatprep.mubr.msk.bf16.mxu1 %vm1691_vm1, %v1690_v3 }
 0x63c   : > { %1279 = vmatprep.subr.bf16.mxu1 %v1690_v3 }
 0x63f   : > { %1280 = vmatpush3.bf16.msra.mxu1 %v1960_v9 }
 0x70d   : > { %v787_v57 = vpop.f32.mrb[8].mxu1 }
 0x70e   : > { %v794_v58 = vadd.f32 %v787_v57, %v744_v56  ;;  %v1275_v59 = vpop.f32.mrb[9].mxu1 }
 0x70f   : > { %v790_v60 = vpop.f32.mrb[10].mxu1 }
 0x710   : > { %1445 = vtanh.f32 %v794_v58  ;;  %v795_v61 = vadd.f32 %v790_v60, %v745_v24  ;;  %v1276_v62 = vpop.f32.mrb[11].mxu1  ;;  %v1186_v0 = vmul.f32 -1.442695, %v794_v58 }
 0x712   : > { %1447 = vtanh.f32 %v795_v61  ;;  %v1187_v3 = vmul.f32 -1.442695, %v795_v61 }
 0x713   : > { %1449 = vpow2.f32 %v1186_v0 }
 0x714   : > { %1451 = vpow2.f32 %v1187_v3  ;;  %v1695_v3 = vmov (!%p1191_p4), 0.0  }
 0x715   : > { %1285 = vmatprep.subr.bf16.mxu0 (!%p1191_p4), %v1695_v3  ;;  %1289 = vmatprep.mubr.msk.bf16.mxu0 (!%p1191_p4), %vm1697_vm3, %v1695_v3 }
 0x71a   : > { %v1446_v63 = vpop.eup %1445 }
 0x71b   : > { %814 = vrot.lane.b32.xlu0 %v1446_v63, %s1693_s10 }
 0x71c   : > { %v1448_v7 = vpop.eup %1447 }
 0x71d   : > { %816 = vrot.lane.b32.xlu1 %v1448_v7, %s1693_s10  ;;  %v1450_v9 = vpop.eup %1449 }
 0x71e   : > { %v1452_v1 = vpop.eup %1451  ;;  %v802_v2 = vadd.f32 1.0, %v1450_v9  ;;  %v1477_v9 = vld [vmem:[#allocation11] sm:$0xff] (!%p1191_p4)  }
 0x71f   : > { %v803_v4 = vadd.f32 1.0, %v1452_v1  ;;  %1286 = vmatpush3.bf16.msra.mxu0 (!%p1191_p4), %v1477_v9  ;;  %v1478_v1 = vld [vmem:[#allocation11 + $0x8] sm:$0xff] (!%p1191_p4)  }
 0x720   : > { %1453 = vrcp.f32 %v802_v2  ;;  %1287 = vmatprep.subr.bf16.mxu0 (!%p1191_p4), %v1695_v3 }
 0x721   : > { %1455 = vrcp.f32 %v803_v4  ;;  %v1192_v4 = vld [vmem:[%s2109_s5] ss:$0 sm:$0xff] (!%p1191_p4) }
 0x723   : > { %1288 = vmatpush3.bf16.msra.mxu0 (!%p1191_p4), %v1478_v1 }
 0x72a   : > { %v1454_v5 = vpop.eup %1453 }
 0x72b   : > { %v1456_v10 = vpop.eup %1455  ;;  %v810_v13 = vmul.f32 %v1454_v5, %v2006_v32  ;;  %v847_v32 = vunpack.c.h.bf16 %v2021_v53 }
 0x72c   : > { %v811_v16 = vmul.f32 %v1456_v10, %v2009_v35 }
 0x78d   : > { %v815_v6 = vpop.permute.xlu0 %814 }
 0x78e   : > { %v820_v8 = vmul.f32 %v1454_v5, %v815_v6 }
 0x78f   : > { %v817_v11 = vpop.permute.xlu1 %816 }
 0x790   : > { %824 = vrot.lane.b32.xlu0 %v820_v8, %s1692_s28  ;;  %v821_v12 = vmul.f32 %v1456_v10, %v817_v11 }
 0x792   : > { %826 = vrot.lane.b32.xlu1 %v821_v12, %s1692_s28 }
 0x802   : > { %v825_v14 = vpop.permute.xlu0 %824 }
 0x803   : > { %v830_v15 = vadd.f32 %v825_v14, %v810_v13 }
 0x804   : > { %v827_v17 = vpop.permute.xlu1 %826 }
 0x805   : > { %1457 = vtanh.f32 %v830_v15  ;;  %v831_v18 = vadd.f32 %v827_v17, %v811_v16 }
 0x807   : > { %1459 = vtanh.f32 %v831_v18 }
 0x80f   : > { %v1458_v19 = vpop.eup %1457 }
 0x810   : > { %836 = vrot.lane.b32.xlu0 %v1458_v19, %s1693_s10 }
 0x811   : > { %v1460_v20 = vpop.eup %1459 }
 0x812   : > { %838 = vrot.lane.b32.xlu1 %v1460_v20, %s1693_s10 }
 0x882   : > { %v837_v21 = vpop.permute.xlu0 %836 }
 0x883   : > { %v842_v23 = vmul.f32 %v1454_v5, %v837_v21 }
 0x884   : > { %v839_v22 = vpop.permute.xlu1 %838 }
 0x885   : > { %v843_v25 = vmul.f32 %v1456_v10, %v839_v22 }
 0x887   : > { %v848_v26 = vpack.c.bf16 %v843_v25, %v842_v23 }
 0x889   : > { %850 = vrot.lane.b32.xlu0 %v848_v26, %s1692_s28 }
 0x8fb   : > { %v851_v27 = vpop.permute.xlu0 %850 }
 0x8fc   : > { %1282 = vmatmul.mubr.msk.bf16.vlgmr.msra.gmra.mrb[12].mxu1 %vm537_vm2, %v851_v27 }
 0x9cf   : > { %v889_v29 = vpop.f32.mrb[12].mxu1 }
 0x9d0   : > { %v896_v30 = vadd.f32 %v889_v29, %v846_v28  ;;  %v1283_v31 = vpop.f32.mrb[13].mxu1 }
 0x9d1   : > { %v892_v33 = vpop.f32.mrb[14].mxu1 }
 0x9d2   : > { %1461 = vtanh.f32 %v896_v30  ;;  %v897_v34 = vadd.f32 %v892_v33, %v847_v32  ;;  %v1284_v35 = vpop.f32.mrb[15].mxu1  ;;  %v1189_v38 = vmul.f32 -1.442695, %v896_v30 }
 0x9d4   : > { %1463 = vtanh.f32 %v897_v34  ;;  %v1190_v39 = vmul.f32 -1.442695, %v897_v34 }
 0x9d5   : > { %1465 = vpow2.f32 %v1189_v38 }
 0x9d6   : > { %1467 = vpow2.f32 %v1190_v39 }
 0x9dc   : > { %v1462_v36 = vpop.eup %1461 }
 0x9dd   : > { %916 = vrot.lane.b32.xlu1 %v1462_v36, %s1693_s10 }
 0x9de   : > { %v1464_v37 = vpop.eup %1463 }
 0x9df   : > { %918 = vrot.lane.b32.xlu0 %v1464_v37, %s1693_s10  ;;  %v1466_v40 = vpop.eup %1465 }
 0x9e0   : > { %v1468_v41 = vpop.eup %1467  ;;  %v904_v42 = vadd.f32 1.0, %v1466_v40 }
 0x9e1   : > { %v905_v43 = vadd.f32 1.0, %v1468_v41 }
 0x9e2   : > { %1469 = vrcp.f32 %v904_v42 }
 0x9e3   : > { %1471 = vrcp.f32 %v905_v43 }
 0x9ec   : > { %v1470_v44 = vpop.eup %1469 }
 0x9ed   : > { %v1472_v47 = vpop.eup %1471  ;;  %v912_v50 = vmul.f32 %v1470_v44, %v830_v15 }
 0x9ee   : > { %v913_v53 = vmul.f32 %v1472_v47, %v831_v18 }
 0xa4f   : > { %v917_v45 = vpop.permute.xlu1 %916 }
 0xa50   : > { %v922_v46 = vmul.f32 %v1470_v44, %v917_v45 }
 0xa51   : > { %v919_v48 = vpop.permute.xlu0 %918 }
 0xa52   : > { %926 = vrot.lane.b32.xlu1 %v922_v46, %s1692_s28  ;;  %v923_v49 = vmul.f32 %v1472_v47, %v919_v48 }
 0xa54   : > { %928 = vrot.lane.b32.xlu0 %v923_v49, %s1692_s28 }
 0xac4   : > { %v927_v51 = vpop.permute.xlu1 %926 }
 0xac5   : > { %v932_v52 = vadd.f32 %v927_v51, %v912_v50 }
 0xac6   : > { %v929_v54 = vpop.permute.xlu0 %928 }
 0xac7   : > { %1473 = vtanh.f32 %v932_v52  ;;  %v933_v55 = vadd.f32 %v929_v54, %v913_v53 }
 0xac9   : > { %1475 = vtanh.f32 %v933_v55 }
 0xad1   : > { %v1474_v56 = vpop.eup %1473 }
 0xad2   : > { %938 = vrot.lane.b32.xlu1 %v1474_v56, %s1693_s10 }
 0xad3   : > { %v1476_v57 = vpop.eup %1475 }
 0xad4   : > { %940 = vrot.lane.b32.xlu0 %v1476_v57, %s1693_s10 }
 0xb44   : > { %v939_v58 = vpop.permute.xlu1 %938 }
 0xb45   : > { %v944_v59 = vmul.f32 %v1470_v44, %v939_v58 }
 0xb46   : > { %v941_v24 = vpop.permute.xlu0 %940 }
 0xb47   : > { %948 = vrot.lane.b32.xlu1 %v944_v59, %s1692_s28  ;;  %v945_v60 = vmul.f32 %v1472_v47, %v941_v24 }
 0xb49   : > { %950 = vrot.lane.b32.xlu0 %v945_v60, %s1692_s28  ;;  %v970_v0 = vpack.c.bf16 (!%p1191_p4), %v945_v60, %v944_v59 }
 0xb4b   : > { %958 = vrot.lane.b32.xlu1 %v932_v52, %s1694_s12 }
 0xb4d   : > { %960 = vrot.lane.b32.xlu0 %v933_v55, %s1694_s12 }
 0xb51   : > { %983 = vrot.lane.b32.xlu0 (!%p1191_p4), %v970_v0, %s1696_s20 }
 0xbb9   : > { %v949_v61 = vpop.permute.xlu1 %948 }
 0xbba   : > { %954 = vst.msk [vmem:[#allocation2] sm:$0xff] %vm537_vm2, %v949_v61  ;;  %969 = sbr.rel (%p1191_p4) target bundleno = 3229 (0xc9d), region = 68 }
 0xbbb   : > { %v951_v62 = vpop.permute.xlu0 %950 }
 0xbbc   : > { %955 = vst.msk [vmem:[#allocation2 + $0x8] sm:$0xff] %vm537_vm2, %v951_v62 }
 0xbbd   : > { %v959_v63 = vpop.permute.xlu1 %958 }
 0xbbe   : > { %964 = vst.msk [vmem:[#allocation3] sm:$0xff] %vm537_vm2, %v959_v63 }
 0xbbf   : > { %v961_v7 = vpop.permute.xlu0 %960 }
 0xbc0   : > { %965 = vst.msk [vmem:[#allocation3 + $0x8] sm:$0xff] %vm537_vm2, %v961_v7 }
 0xbc3   : > { %v984_v2 = vpop.permute.xlu0 %983 }
 0xbc4   : > { %1290 = vmatmul.mubr.msk.bf16.vlgmr.msra.gmra.mrb[0].mxu0 %vm537_vm2, %v984_v2 }
 0xc97   : > { %v1034_v5 = vpop.f32.mrb[0].mxu0 }
 0xc98   : > { %v1035_v6 = vadd.f32 %v1192_v4, %v1034_v5  ;;  %v1291_v8 = vpop.f32.mrb[1].mxu0 }
 0xc99   : > { %v1037_v10 = vpop.f32.mrb[2].mxu0 }
 0xc9a   : > { %1041 = vst [vmem:[#allocation13] sm:$0xff] %v1035_v6  ;;  %v1038_v11 = vadd.f32 %v1192_v4, %v1037_v10  ;;  %v1292_v12 = vpop.f32.mrb[3].mxu0 }
 0xc9c   : > { %1042 = vst [vmem:[#allocation13 + $0x8] sm:$0xff] %v1038_v11 }
 0xc9d PF: > { %s2125_s24 = sadd.s32 4294967295, %s1681_s26   ;;  %s1698_s14 = smov [#allocation13]  }
 0xc9e   : > { %p2060_p5 = scmp.eq.s32.totalorder %s2125_s24, 1  ;;  %s1052_s7 = sshll.u32 %s1698_s14, 4  ;;  %s1053_s7 = int_to_ptr.vmem [resolvable:$true] %s1052_s7 }
 0xc9f   : > { %s1593_s15 = scalar_lea.vmem %s1053_s7, 256  ;;  %p1600_p0 = scmp.lt.s32.totalorder %s1053_s7, %s1053_s7 }
 0xca0   : > { %p1594_p9 = scmp.ne.s32.totalorder %s1053_s7, %s1593_s15  ;;  %p1601_p2 = scmp.lt.s32.totalorder %s1593_s15, %s1593_s15 }
 0xca2   : > { %p1595_p12 = pnand %p1594_p9, %p2060_p5  ;;  %p1602_p6 = por %p1601_p2, %p1600_p0 }
 0xca4   : > { %p1596_p13 = pneg %p1595_p12 }
 0xca6   : > { %p1603_p10 = pnand %p1602_p6, %p1596_p13 }
 0xca8   : > { %1606 = shalt.err (!%p1603_p10)
}
 0xca9   : > { %s1607_s17 = scalar_lea.hbm %s2110_s6, 256 }
 0xcaa   : > { %p1608_p1 = scmp.ne.s32.totalorder %s2110_s6, %s1607_s17  ;;  %p1613_p11 = scmp.lt.u32.totalorder %s1607_s17, %s2110_s6 }
 0xcac   : > { %p1609_p3 = pnand %p1608_p1, %p2060_p5 }
 0xcae   : > { %p1610_p8 = pneg %p1609_p3 }
 0xcb0   : > { %p1615_p7 = pnand %p1613_p11, %p1610_p8 }
 0xcb2   : > { %1618 = shalt.err (!%p1615_p7)
}
 0xcb3   : > { %s1699_s30 = smov 128   ;;  %s1700_s10 = smov 8  }
 0xcb4   : > { %1308 = dma.vmem_to_hbm [thread:$0]  (%p2060_p5), %s1053_s7, 256, %s2110_s6, [#allocation7], %s1699_s30, %s1699_s30, %s1700_s10  }
 0xcb5   : > { %1656 = dma.done.wait (%p2060_p5), [#allocation7], 256  }
 0xcb6   : > { %1658 = vsyncadd (%p2060_p5), [#allocation7], 4294967040 }
 0xcb7 PF: > { %s22_s26 = sadd.s32 1, %s1681_s26   ;;  %s2127_s8 = smov %s1891_s21 }
 0xcb8   : > { %p19_p4 = scmp.ge.s32.totalorder %s22_s26, 4   ;;  %s2128_s21 = smov %s1665_s22 }
 0xcb9   : > { %s2129_s22 = smov %s1669_s23  ;;  %s2130_s23 = smov %s2127_s8 }
 0xcba   : > { %s2131_s24 = smov %s1677_s25  ;;  %s2132_s25 = smov %s2134_s19 }
 0xcbb   :  { %21 = sbr.rel (!%p19_p4) target bundleno = 7 (0x7), region = 105 }
 0xcc2   :  { %1068 = vsyncpa [#allocation6], 1 }
 0xcc3   :  { %1070 = vsyncpa [#allocation6 + $0x1], 1 }
 0xcc4   :  { %1071 = vsyncpa [#allocation9], 1 }
 0xcc5   :  { %1072 = vsyncpa [#allocation12], 1 }
 0xcc6   :  { %1073 = vsyncpa [#allocation7], 1 }
 0xcc7   :  { %1075 = vsyncpa [#allocation7 + $0x1], 1 }

// kernel: tpu_custom_call.1
= control target key start
LH: loop header
LB: loop body
LE: loop exit
PB: predicated region body
PF: predicated region fallthrough
CT: control target
= control target key end

     0   :  { %11 = vsyncpa [#allocation6], 0  ;;  %s2104_s0 = inlined_call_operand.hbm [shape: bf16[8,16,128], index: 0, kind: input, shape index: {}]   ;;  %s2105_s1 = inlined_call_operand.hbm [shape: bf16[128,128], index: 1, kind: input, shape index: {}]   ;;  %s2106_s2 = inlined_call_operand.hbm [shape: bf16[32,128], index: 2, kind: input, shape index: {}]   ;;  %s2107_s3 = inlined_call_operand.vmem [shape: f32[1,128], index: 3, kind: input, shape index: {}]   ;;  %s2108_s4 = inlined_call_operand.hbm [shape: bf16[32,128], index: 4, kind: input, shape index: {}]   ;;  %s2109_s5 = inlined_call_operand.vmem [shape: f32[1,128], index: 5, kind: input, shape index: {}]   ;;  %s2110_s6 = inlined_call_operand.hbm [shape: f32[16,128], index: 6, kind: output, shape index: {}]  }
   0x1   :  { %13 = vsyncpa [#allocation6 + $0x1], 0 }
   0x2   :  { %14 = vsyncpa [#allocation9], 0 }
   0x3   :  { %15 = vsyncpa [#allocation12], 0 }
   0x4   :  { %16 = vsyncpa [#allocation7], 0  ;;  %s1736_s21 = smov 0   ;;  %s1738_s22 = smov 0  }
   0x5   :  { %s1740_s23 = smov 0   ;;  %s1742_s24 = smov 0  }
   0x6   :  { %s1744_s25 = smov 0   ;;  %s1746_s26 = smov 0  }
   0x7 LB: > { %s2113_s27 = sadd.s32 4294967295, %s1681_s26   ;;  %p56_p0 = scmp.ne.s32.totalorder %s1665_s22, %s1661_s21  ;;  %s1681_s26 = sphi %s1746_s26, %s22_s26   ;;  %s1677_s25 = sphi %s1744_s25, %s2132_s25   ;;  %s1673_s24 = sphi %s1742_s24, %s2131_s24   ;;  %s1669_s23 = sphi %s1740_s23, %s2130_s23   ;;  %s1665_s22 = sphi %s1738_s22, %s2129_s22   ;;  %s1661_s21 = sphi %s1736_s21, %s2128_s21  }
   0x8   : > { %p1768_p1 = scmp.eq.s32.totalorder %s2113_s27, 0  ;;  %p1149_p2 = scmp.ge.s32.totalorder %s1681_s26, 1 }
   0x9   : > { %p198_p3 = scmp.lt.s32.totalorder %s1681_s26, 3  ;;  %s1683_s7 = smov [#allocation8]  }
   0xa   : > { %s2116_s28 = scalar_select %p1768_p1, 1, 0 }
   0xb   : > { %p1776_p4 = por %p1768_p1, %p56_p0  ;;  %p1780_p5 = pnand %p1149_p2, %p198_p3 }
   0xc   : > { %s210_s8 = sshll.u32 %s1683_s7, 4  ;;  %s1684_s10 = smov [#allocation10]   ;;  %s1784_s8 = int_to_ptr.vmem [resolvable:$true] %s210_s8 }
   0xd   : > { %s2117_s29 = scalar_select %p1776_p4, 1, 0 }
   0xe   : > { %s2118_s30 = scalar_select %p1780_p5, 1, 0 }
   0xf   : > { %p1311_p6 = pneg %p1780_p5  ;;  %s223_s11 = sshll.u32 %s1684_s10, 4  ;;  %s1794_s11 = int_to_ptr.vmem [resolvable:$true] %s223_s11 }
  0x10   : > { %s1685_s12 = smov [#allocation11]   ;;  %s1479_s16 = scalar_lea.hbm %s2105_s1, 1024 }
  0x11   : > { %p1790_p7 = pnand %p1311_p6, %p1768_p1  ;;  %s1796_s13 = sshll.u32 %s1685_s12, 4  ;;  %s240_s13 = int_to_ptr.vmem [resolvable:$true] %s1796_s13 }
  0x12   : > { %p1480_p8 = scmp.ne.s32.totalorder %s2105_s1, %s1479_s16  ;;  %p1486_p12 = scmp.lt.u32.totalorder %s1479_s16, %s2105_s1 }
  0x13   : > { %p1806_p9 = pneg %p1790_p7 }
  0x15   : > { %p1482_p10 = pnand %p1806_p9, %p1480_p8 }
  0x17   : > { %p1483_p11 = pneg %p1482_p10 }
  0x19   : > { %p1488_p13 = pnand %p1486_p12, %p1483_p11 }
  0x1b   : > { %1491 = shalt.err (!%p1488_p13)
}
  0x1c   : > { %s1492_s7 = scalar_lea.vmem %s1784_s8, 1024  ;;  %p1500_p6 = scmp.lt.s32.totalorder %s1784_s8, %s1784_s8 }
  0x1d   : > { %p1493_p0 = scmp.ne.s32.totalorder %s1784_s8, %s1492_s7  ;;  %p1501_p1 = scmp.lt.s32.totalorder %s1492_s7, %s1492_s7 }
  0x1f   : > { %p1495_p2 = pnand %p1493_p0, %p1806_p9  ;;  %p1502_p8 = por %p1501_p1, %p1500_p6 }
  0x21   : > { %p1496_p3 = pneg %p1495_p2 }
  0x23   : > { %p1503_p10 = pnand %p1502_p8, %p1496_p3 }
  0x25   : > { %1506 = shalt.err (!%p1503_p10)
}
  0x26   : > { %s1686_s10 = smov 64   ;;  %s1687_s12 = smov 4  }
  0x27   : > { %1314 = dma.hbm_to_vmem [thread:$0]  (!%p1790_p7), %s2105_s1, 1024, %s1784_s8, [#allocation9], %s1686_s10, %s1686_s10, %s1687_s12  }
  0x28   : > { %s1507_s18 = scalar_lea.hbm %s2106_s2, 256 }
  0x29   : > { %p1508_p1 = scmp.ne.s32.totalorder %s2106_s2, %s1507_s18  ;;  %p1514_p13 = scmp.lt.u32.totalorder %s1507_s18, %s2106_s2 }
  0x2b   : > { %p1510_p11 = pnand %p1508_p1, %p1806_p9 }
  0x2d   : > { %p1511_p12 = pneg %p1510_p11 }
  0x2f   : > { %p1516_p0 = pnand %p1514_p13, %p1511_p12 }
  0x31   : > { %1519 = shalt.err (!%p1516_p0)
}
  0x32   : > { %s1520_s8 = scalar_lea.vmem %s1794_s11, 256  ;;  %p1528_p8 = scmp.lt.s32.totalorder %s1794_s11, %s1794_s11 }
  0x33   : > { %p1521_p2 = scmp.ne.s32.totalorder %s1794_s11, %s1520_s8  ;;  %p1529_p10 = scmp.lt.s32.totalorder %s1520_s8, %s1520_s8 }
  0x35   : > { %p1523_p3 = pnand %p1521_p2, %p1806_p9  ;;  %p1530_p1 = por %p1529_p10, %p1528_p8 }
  0x37   : > { %p1524_p6 = pneg %p1523_p3 }
  0x39   : > { %p1531_p11 = pnand %p1530_p1, %p1524_p6 }
  0x3b   : > { %1534 = shalt.err (!%p1531_p11)
}
  0x3c   : > { %1317 = dma.hbm_to_vmem [thread:$0]  (!%p1790_p7), %s2106_s2, 256, %s1794_s11, [#allocation9], %s1686_s10, %s1686_s10, %s1687_s12  }
  0x3d   : > { %s1535_s17 = scalar_lea.hbm %s2108_s4, 256 }
  0x3e   : > { %p1536_p12 = scmp.ne.s32.totalorder %s2108_s4, %s1535_s17  ;;  %p1542_p2 = scmp.lt.u32.totalorder %s1535_s17, %s2108_s4 }
  0x40   : > { %p1538_p13 = pnand %p1536_p12, %p1806_p9 }
  0x42   : > { %p1539_p0 = pneg %p1538_p13 }
  0x44   : > { %p1544_p3 = pnand %p1542_p2, %p1539_p0 }
  0x46   : > { %1547 = shalt.err (!%p1544_p3)
}
  0x47   : > { %s1548_s8 = scalar_lea.vmem %s240_s13, 256  ;;  %p1556_p1 = scmp.lt.s32.totalorder %s240_s13, %s240_s13 }
  0x48   : > { %p1549_p6 = scmp.ne.s32.totalorder %s240_s13, %s1548_s8  ;;  %p1557_p11 = scmp.lt.s32.totalorder %s1548_s8, %s1548_s8 }
  0x4a   : > { %p1551_p8 = pnand %p1549_p6, %p1806_p9  ;;  %p1558_p4 = por %p1557_p11, %p1556_p1 }
  0x4c   : > { %p1552_p10 = pneg %p1551_p8 }
  0x4e   : > { %p1559_p5 = pnand %p1558_p4, %p1552_p10 }
  0x50   : > { %1562 = shalt.err (!%p1559_p5)
}
  0x51   : > { %1320 = dma.hbm_to_vmem [thread:$0]  (!%p1790_p7), %s2108_s4, 256, %s240_s13, [#allocation12], %s1686_s10, %s1686_s10, %s1687_s12  }
  0x52   : > { %s31_s19 = sadd.s32 1, %s1677_s25  ;;  %p50_p4 = scmp.ne.s32.totalorder %s1669_s23, %s1665_s22 }
  0x53   : > { %p32_p5 = scmp.ge.s32.totalorder %s31_s19, 2  ;;  %p51_p9 = scmp.eq.s32.totalorder %s1681_s26, 0 }
  0x54   : > { %s43_s9 = sadd.s32 1, %s1669_s23  ;;  %s256_s14 = sand.u32 1, %s1669_s23  }
  0x55   : > { %s2134_s19 = smov (%p32_p5, %s31_s19), 0  ;;  %p52_p12 = por %p51_p9, %p50_p4 }
  0x56   : > { %p1328_p13 = scmp.lt.s32.totalorder %s1681_s26, 2  ;;  %s38_s15 = ssub.s32 %s1677_s25, %s2134_s19 }
  0x57   : > { %s1154_s16 = sshll.u32 %s256_s14, 5  ;;  %p41_p0 = scmp.eq.s32.totalorder %s38_s15, 0 }
  0x58   : > { %s1201_s17 = sshll.u32 %s1677_s25, 9  ;;  %s260_s18 = scalar_lea.vmem [#allocation5], %s1154_s16 }
  0x59   : > { %s270_s20 = sshll.u32 %s260_s18, 4  ;;  %s1896_s8 = scalar_lea.hbm %s2104_s0, %s1201_s17  ;;  %s1898_s20 = int_to_ptr.vmem [resolvable:$true] %s270_s20 }
  0x5a   : > { %s1891_s21 = scalar_select %p41_p0, %s1669_s23, %s43_s9  }
  0x5b   : > { %p1900_p7 = pnand %p1328_p13, %p52_p12  ;;  %s1904_s27 = scalar_lea.sflag [#allocation6], %s256_s14 }
  0x5c   : > { %s1563_s9 = scalar_lea.hbm %s1896_s8, 512  ;;  %s1568_s17 = scalar_lea.hbm %s2104_s0, 1024 }
  0x5d   : > { %p1564_p2 = scmp.ne.s32.totalorder %s1896_s8, %s1563_s9  ;;  %p1565_p3 = pneg %p1900_p7 }
  0x5e   : > { %p1569_p10 = scmp.lt.u32.totalorder %s1896_s8, %s2104_s0  ;;  %p1570_p1 = scmp.lt.u32.totalorder %s1568_s17, %s1563_s9 }
  0x5f   : > { %p1566_p6 = pnand %p1565_p3, %p1564_p2  ;;  %p1572_p4 = scmp.lt.u32.totalorder %s1563_s9, %s1896_s8 }
  0x60   : > { %p1571_p11 = por %p1570_p1, %p1569_p10 }
  0x61   : > { %p1567_p8 = pneg %p1566_p6 }
  0x62   : > { %p1573_p5 = por %p1572_p4, %p1571_p11 }
  0x64   : > { %p1574_p9 = pnand %p1573_p5, %p1567_p8 }
  0x66   : > { %1577 = shalt.err (!%p1574_p9)
}
  0x67   : > { %s1578_s14 = scalar_lea.vmem %s1898_s20, 512  ;;  %s1688_s7 = smov [#allocation5]  }
  0x68   : > { %p1579_p12 = scmp.ne.s32.totalorder %s1898_s20, %s1578_s14  ;;  %s1583_s15 = sshll.u32 %s1688_s7, 4  ;;  %s1584_s15 = int_to_ptr.vmem [resolvable:$false] %s1583_s15 }
  0x69   : > { %s1585_s16 = scalar_lea.vmem %s1584_s15, 1024  ;;  %p1586_p2 = scmp.lt.s32.totalorder %s1898_s20, %s1584_s15 }
  0x6a   : > { %p1581_p13 = pnand %p1579_p12, %p1565_p3  ;;  %p1587_p6 = scmp.lt.s32.totalorder %s1585_s16, %s1578_s14 }
  0x6c   : > { %p1582_p0 = pneg %p1581_p13  ;;  %p1588_p10 = por %p1587_p6, %p1586_p2 }
  0x6e   : > { %p1589_p1 = pnand %p1588_p10, %p1582_p0 }
  0x70   : > { %1592 = shalt.err (!%p1589_p1)
}
  0x71   : > { %1324 = dma.hbm_to_vmem [thread:$0]  (!%p1900_p7), %s1896_s8, 512, %s1898_s20, %s1904_s27, %s1686_s10, %s1686_s10, %s1687_s12  }
  0x72   : > { %p2122_p3 = scmp.ne.s32.totalorder %s2118_s30, 0 }
  0x73   : > { %s284_s9 = sand.u32 (!%p2122_p3), 1, %s1665_s22   ;;  %p2123_p8 = scmp.ne.s32.totalorder (!%p2122_p3), %s2117_s29, 0 }
  0x74   : > { %282 = sbr.rel (%p2122_p3) target bundleno = 3255 (0xcb7), region = 44  ;;  %s1159_s17 = sshll.u32 (!%p2122_p3), %s284_s9, 5 }
  0x75   : > { %s285_s18 = scalar_lea.sflag (!%p2122_p3), [#allocation6], %s284_s9  ;;  %s1938_s13 = scalar_lea.vmem (!%p2122_p3), [#allocation5], %s1159_s17 }
  0x7b   : > { %1644 = dma.done.wait (%p2123_p8), %s285_s18, 512  }
  0x7c   : > { %1646 = vsyncadd (%p2123_p8), %s285_s18, 4294966784  ;;  %p2124_p11 = scmp.ne.s32.totalorder %s2116_s28, 0 }
  0x7e   : > { %1648 = dma.done.wait (%p2124_p11), [#allocation9], 1280  }
  0x7f   : > { %1650 = vsyncadd (%p2124_p11), [#allocation9], 4294966016 }
  0x80   : > { %1652 = dma.done.wait (%p2124_p11), [#allocation12], 256  }
  0x81   : > { %1654 = vsyncadd (%p2124_p11), [#allocation12], 4294967040  ;;  %p1163_p7 = scmp.ne.s32.totalorder %s1673_s24, 0 }
  0x82   : > { %vm332_vm0 = vcmask (!%p1163_p7), 261120   ;;  %v1689_v0 = vmov (!%p1163_p7), 0.0  }
  0x83   : > { %331 = sbr.rel (%p1163_p7) target bundleno = 138 (0x8a), region = 64  ;;  %333 = vst.msk [vmem:[#allocation2] sm:$0xff] (!%p1163_p7), %vm332_vm0, %v1689_v0  ;;  %334 = vst.msk [vmem:[#allocation2 + $0x8] sm:$0xff] (!%p1163_p7), %vm332_vm0, %v1689_v0 }
  0x84   : > { %335 = vst.msk [vmem:[#allocation3] sm:$0xff] (!%p1163_p7), %vm332_vm0, %v1689_v0  ;;  %336 = vst.msk [vmem:[#allocation3 + $0x8] sm:$0xff] (!%p1163_p7), %vm332_vm0, %v1689_v0 }
  0x8a PF: > { %v1399_v1 = vld [vmem:[#allocation8] sm:$0xff]   ;;  %v1400_v2 = vld [vmem:[#allocation8 + $0x8] sm:$0xff]   ;;  %v1690_v3 = vmov 0.0   ;;  %vm1691_vm1 = vmmov 0   ;;  %v1401_v4 = vld [vmem:[#allocation8 + $0x10] sm:$0xff]   ;;  %s1692_s28 = smov 32  }
  0x8b   : > { %1253 = vmatprep.subr.bf16.mxu1 %v1690_v3  ;;  %1229 = vmatprep.subr.bf16.mxu0 %v1399_v1  ;;  %v1402_v5 = vld [vmem:[#allocation8 + $0x18] sm:$0xff]   ;;  %v1407_v6 = vld [vmem:[%s1938_s13] sm:$0xff]   ;;  %v1960_v9 = vld [vmem:[#allocation10 + $0x8] sm:$0xff]   ;;  %vm537_vm2 = vcmask 261120   ;;  %s1693_s10 = smov 64   ;;  %s1694_s12 = smov 96  }
  0x8c   : > { %1257 = vmatprep.mubr.msk.bf16.mxu1 %vm1691_vm1, %v1690_v3  ;;  %1230 = vmatpush3.bf16.msra.mxu0 %v1399_v1  ;;  %v1957_v7 = vld [vmem:[#allocation10] sm:$0xff]   ;;  %v518_v11 = vld [vmem:[#allocation2 + $0x8] sm:$0xff]  ;;  %v519_v12 = vld [vmem:[#allocation3] sm:$0xff]  ;;  %p1191_p4 = scmp.ne.s32.totalorder %s1673_s24, 1 }
  0x8d   : > { %1231 = vmatprep.subr.bf16.mxu0 %v1400_v2  ;;  %v1403_v8 = vld [vmem:[#allocation8 + $0x20] sm:$0xff]   ;;  %1245 = vmatprep.mubr.bf16.mxu0 %v1407_v6  ;;  %v520_v14 = vld [vmem:[#allocation3 + $0x8] sm:$0xff]  ;;  %v1404_v15 = vld [vmem:[#allocation8 + $0x28] sm:$0xff]   ;;  %s1696_s20 = smov (!%p1191_p4), 32   ;;  %vm1697_vm3 = vmmov (!%p1191_p4), 0  }
  0x8e   : > { %1254 = vmatpush3.bf16.msra.mxu1 %v1957_v7  ;;  %v517_v10 = vld [vmem:[#allocation2] sm:$0xff]  ;;  %600 = vrot.lane.b32.xlu1 %v519_v12, %s1692_s28  ;;  %v1405_v16 = vld [vmem:[#allocation8 + $0x30] sm:$0xff]   ;;  %v1406_v17 = vld [vmem:[#allocation8 + $0x38] sm:$0xff]  }
  0x8f   : > { %1255 = vmatprep.subr.bf16.mxu1 %v1690_v3  ;;  %v524_v13 = vpack.c.bf16 %v518_v11, %v517_v10  ;;  %v1409_v18 = vld [vmem:[%s1938_s13 + $0x8] sm:$0xff]   ;;  %v1978_v24 = vld [vmem:[%s2107_s3] ss:$0 sm:$0xff] }
  0x90   : > { %1232 = vmatpush3.bf16.msra.mxu0 %v1400_v2 }
  0x91   : > { %1233 = vmatprep.subr.bf16.mxu0 %v1401_v4 }
  0x92   : > { %1256 = vmatpush3.bf16.msra.mxu1 %v1960_v9  ;;  %602 = vrot.lane.b32.xlu1 %v520_v14, %s1692_s28 }
  0x93   : > { %1261 = vmatprep.subr.bf16.mxu1 %v1690_v3 }
  0x94   : > { %1234 = vmatpush3.bf16.msra.mxu0 %v1401_v4 }
  0x95   : > { %1235 = vmatprep.subr.bf16.mxu0 %v1402_v5  ;;  %1258 = vmatmul.mubr.msk.bf16.vlgmr.msra.gmra.mrb[0].mxu1 %vm537_vm2, %v524_v13 }
  0x96   : > { %1262 = vmatpush3.bf16.msra.mxu1 %v1957_v7  ;;  %1265 = vmatprep.mubr.msk.bf16.mxu1 %vm1691_vm1, %v1690_v3 }
  0x97   : > { %1263 = vmatprep.subr.bf16.mxu1 %v1690_v3 }
  0x98   : > { %1236 = vmatpush3.bf16.msra.mxu0 %v1402_v5 }
  0x99   : > { %1237 = vmatprep.subr.bf16.mxu0 %v1403_v8 }
  0x9a   : > { %1264 = vmatpush3.bf16.msra.mxu1 %v1960_v9 }
  0x9b   : > { %1269 = vmatprep.subr.bf16.mxu1 %v1690_v3 }
  0x9c   : > { %1238 = vmatpush3.bf16.msra.mxu0 %v1403_v8 }
  0x9d   : > { %1239 = vmatprep.subr.bf16.mxu0 %v1404_v15 }
  0xa0   : > { %1240 = vmatpush3.bf16.msra.mxu0 %v1404_v15 }
  0xa1   : > { %1241 = vmatprep.subr.bf16.mxu0 %v1405_v16 }
  0xa4   : > { %1242 = vmatpush3.bf16.msra.mxu0 %v1405_v16 }
  0xa5   : > { %1243 = vmatprep.subr.bf16.mxu0 %v1406_v17 }
  0xa8   : > { %1244 = vmatpush3.bf16.msra.mxu0 %v1406_v17 }
  0xab   : > { %1246 = vmatmul.mubr.bf16.vlgmr.msra.gmra.mrb[0].mxu0 %v1409_v18 }
 0x100   : > { %v601_v52 = vpop.permute.xlu1 %600 }
 0x104   : > { %v603_v54 = vpop.permute.xlu1 %602 }
 0x168   : > { %v575_v19 = vpop.f32.mrb[0].mxu1 }
 0x169   : > { %v1259_v20 = vpop.f32.mrb[1].mxu1 }
 0x16a   : > { %v578_v21 = vpop.f32.mrb[2].mxu1 }
 0x16b   : > { %v1260_v22 = vpop.f32.mrb[3].mxu1 }
 0x17e   : > { %v1247_v23 = vpop.f32.mrb[0].mxu0 }
 0x17f   : > { %v474_v25 = vpop.f32.mrb[1].mxu0  ;;  %v483_v27 = vadd.f32 %v1247_v23, %v1978_v24 }
 0x180   : > { %v1248_v26 = vpop.f32.mrb[2].mxu0  ;;  %v475_v30 = vadd.f32 %v1978_v24, %v474_v25 }
 0x181   : > { %v486_v28 = vadd.f32 %v1248_v26, %v1978_v24  ;;  %v477_v29 = vpop.f32.mrb[3].mxu0 }
 0x182   : > { %v478_v31 = vadd.f32 %v1978_v24, %v477_v29 }
 0x183   : > { %v1984_v32 = vpack.c.bf16 %v486_v28, %v483_v27 }
 0x184   : > { %v505_v33 = vpack.c.bf16 %v478_v31, %v475_v30 }
 0x185   : > { %v642_v5 = vunpack.c.l.bf16 %v1984_v32  ;;  %v643_v11 = vunpack.c.h.bf16 %v1984_v32 }
 0x186   : > { %v522_v34 = vunpack.c.l.bf16 %v505_v33  ;;  %v523_v35 = vunpack.c.h.bf16 %v505_v33 }
 0x188   : > { %v582_v36 = vadd.f32 %v575_v19, %v522_v34  ;;  %v583_v37 = vadd.f32 %v578_v21, %v523_v35 }
 0x18a   : > { %1413 = vtanh.f32 %v582_v36  ;;  %v1180_v40 = vmul.f32 -1.442695, %v582_v36  ;;  %v1181_v41 = vmul.f32 -1.442695, %v583_v37  ;;  %v1411_v36 = vld [vmem:[%s1938_s13 + $0x10] sm:$0xff]  }
 0x18b   : > { %1415 = vtanh.f32 %v583_v37  ;;  %v1412_v37 = vld [vmem:[%s1938_s13 + $0x18] sm:$0xff]   ;;  %1249 = vmatprep.mubr.bf16.mxu0 %v1411_v36 }
 0x18c   : > { %1417 = vpow2.f32 %v1180_v40  ;;  %1250 = vmatmul.mubr.bf16.gmra.mrb[4].mxu0 %v1412_v37 }
 0x18d   : > { %1419 = vpow2.f32 %v1181_v41 }
 0x194   : > { %v1414_v38 = vpop.eup %1413 }
 0x195   : > { %610 = vrot.lane.b32.xlu0 %v1414_v38, %s1693_s10  ;;  %v1416_v39 = vpop.eup %1415 }
 0x196   : > { %v1418_v42 = vpop.eup %1417 }
 0x197   : > { %v590_v43 = vadd.f32 1.0, %v1418_v42  ;;  %v1420_v44 = vpop.eup %1419 }
 0x198   : > { %v591_v45 = vadd.f32 1.0, %v1420_v44 }
 0x199   : > { %612 = vrot.lane.b32.xlu0 %v1416_v39, %s1693_s10  ;;  %1421 = vrcp.f32 %v590_v43 }
 0x19a   : > { %1423 = vrcp.f32 %v591_v45 }
 0x1a3   : > { %v1422_v46 = vpop.eup %1421 }
 0x1a4   : > { %v1424_v49 = vpop.eup %1423  ;;  %v606_v53 = vmul.f32 %v1422_v46, %v601_v52 }
 0x1a5   : > { %v607_v57 = vmul.f32 %v1424_v49, %v603_v54 }
 0x207   : > { %v611_v47 = vpop.permute.xlu0 %610 }
 0x208   : > { %v616_v48 = vmul.f32 %v1422_v46, %v611_v47 }
 0x20a   : > { %620 = vrot.lane.b32.xlu0 %v616_v48, %s1692_s28 }
 0x20b   : > { %v613_v50 = vpop.permute.xlu0 %612 }
 0x20c   : > { %v617_v51 = vmul.f32 %v1424_v49, %v613_v50 }
 0x20e   : > { %622 = vrot.lane.b32.xlu1 %v617_v51, %s1692_s28 }
 0x25f   : > { %v1251_v45 = vpop.f32.mrb[4].mxu0 }
 0x260   : > { %v490_v47 = vpop.f32.mrb[5].mxu0 }
 0x261   : > { %v491_v48 = vadd.f32 %v1978_v24, %v490_v47 }
 0x27c   : > { %v621_v55 = vpop.permute.xlu0 %620 }
 0x27d   : > { %v626_v56 = vadd.f32 %v621_v55, %v606_v53 }
 0x27f   : > { %1425 = vtanh.f32 %v626_v56 }
 0x280   : > { %v623_v58 = vpop.permute.xlu1 %622 }
 0x281   : > { %v627_v59 = vadd.f32 %v623_v58, %v607_v57 }
 0x283   : > { %1427 = vtanh.f32 %v627_v59 }
 0x289   : > { %v1426_v60 = vpop.eup %1425 }
 0x28a   : > { %632 = vrot.lane.b32.xlu0 %v1426_v60, %s1693_s10 }
 0x28d   : > { %v1428_v61 = vpop.eup %1427 }
 0x28e   : > { %634 = vrot.lane.b32.xlu1 %v1428_v61, %s1693_s10 }
 0x2fc   : > { %v633_v62 = vpop.permute.xlu0 %632 }
 0x2fd   : > { %v638_v0 = vmul.f32 %v1422_v46, %v633_v62  ;;  %v499_v46 = vadd.f32 %v1251_v45, %v1978_v24 }
 0x300   : > { %v635_v63 = vpop.permute.xlu1 %634 }
 0x301   : > { %v639_v1 = vmul.f32 %v1424_v49, %v635_v63  ;;  %v1252_v49 = vpop.f32.mrb[6].mxu0 }
 0x302   : > { %v502_v50 = vadd.f32 %v1252_v49, %v1978_v24  ;;  %v493_v51 = vpop.f32.mrb[7].mxu0 }
 0x303   : > { %v644_v2 = vpack.c.bf16 %v639_v1, %v638_v0  ;;  %v494_v52 = vadd.f32 %v1978_v24, %v493_v51 }
 0x304   : > { %v2021_v53 = vpack.c.bf16 %v502_v50, %v499_v46 }
 0x305   : > { %646 = vrot.lane.b32.xlu0 %v644_v2, %s1692_s28  ;;  %v507_v54 = vpack.c.bf16 %v494_v52, %v491_v48 }
 0x307   : > { %v745_v24 = vunpack.c.h.bf16 %v507_v54 }
 0x377   : > { %v647_v4 = vpop.permute.xlu0 %646 }
 0x378   : > { %1266 = vmatmul.mubr.msk.bf16.vlgmr.msra.gmra.mrb[4].mxu1 %vm537_vm2, %v647_v4 }
 0x379   : > { %1270 = vmatpush3.bf16.msra.mxu1 %v1957_v7  ;;  %1273 = vmatprep.mubr.msk.bf16.mxu1 %vm1691_vm1, %v1690_v3 }
 0x37a   : > { %1271 = vmatprep.subr.bf16.mxu1 %v1690_v3 }
 0x37d   : > { %1272 = vmatpush3.bf16.msra.mxu1 %v1960_v9 }
 0x37e   : > { %1277 = vmatprep.subr.bf16.mxu1 %v1690_v3 }
 0x44b   : > { %v685_v6 = vpop.f32.mrb[4].mxu1 }
 0x44c   : > { %v692_v8 = vadd.f32 %v685_v6, %v642_v5  ;;  %v1267_v10 = vpop.f32.mrb[5].mxu1 }
 0x44d   : > { %v688_v12 = vpop.f32.mrb[6].mxu1 }
 0x44e   : > { %1429 = vtanh.f32 %v692_v8  ;;  %v693_v13 = vadd.f32 %v688_v12, %v643_v11  ;;  %v1268_v14 = vpop.f32.mrb[7].mxu1  ;;  %v1183_v17 = vmul.f32 -1.442695, %v692_v8 }
 0x450   : > { %1431 = vtanh.f32 %v693_v13  ;;  %v1184_v18 = vmul.f32 -1.442695, %v693_v13 }
 0x451   : > { %1433 = vpow2.f32 %v1183_v17 }
 0x452   : > { %1435 = vpow2.f32 %v1184_v18 }
 0x458   : > { %v1430_v15 = vpop.eup %1429 }
 0x459   : > { %712 = vrot.lane.b32.xlu1 %v1430_v15, %s1693_s10 }
 0x45a   : > { %v1432_v16 = vpop.eup %1431 }
 0x45b   : > { %714 = vrot.lane.b32.xlu0 %v1432_v16, %s1693_s10  ;;  %v1434_v19 = vpop.eup %1433 }
 0x45c   : > { %v1436_v20 = vpop.eup %1435  ;;  %v700_v21 = vadd.f32 1.0, %v1434_v19 }
 0x45d   : > { %v701_v22 = vadd.f32 1.0, %v1436_v20 }
 0x45e   : > { %1437 = vrcp.f32 %v700_v21 }
 0x45f   : > { %1439 = vrcp.f32 %v701_v22 }
 0x468   : > { %v1438_v23 = vpop.eup %1437 }
 0x469   : > { %v1440_v27 = vpop.eup %1439  ;;  %v708_v30 = vmul.f32 %v1438_v23, %v626_v56  ;;  %v744_v56 = vunpack.c.l.bf16 %v507_v54 }
 0x46a   : > { %v709_v33 = vmul.f32 %v1440_v27, %v627_v59 }
 0x4cb   : > { %v713_v25 = vpop.permute.xlu1 %712 }
 0x4cc   : > { %v718_v26 = vmul.f32 %v1438_v23, %v713_v25 }
 0x4cd   : > { %v715_v28 = vpop.permute.xlu0 %714 }
 0x4ce   : > { %722 = vrot.lane.b32.xlu1 %v718_v26, %s1692_s28  ;;  %v719_v29 = vmul.f32 %v1440_v27, %v715_v28  ;;  %v846_v28 = vunpack.c.l.bf16 %v2021_v53 }
 0x4d0   : > { %724 = vrot.lane.b32.xlu0 %v719_v29, %s1692_s28 }
 0x540   : > { %v723_v31 = vpop.permute.xlu1 %722 }
 0x541   : > { %v2006_v32 = vadd.f32 %v723_v31, %v708_v30 }
 0x542   : > { %v725_v34 = vpop.permute.xlu0 %724 }
 0x543   : > { %1441 = vtanh.f32 %v2006_v32  ;;  %v2009_v35 = vadd.f32 %v725_v34, %v709_v33 }
 0x545   : > { %1443 = vtanh.f32 %v2009_v35 }
 0x54d   : > { %v1442_v38 = vpop.eup %1441 }
 0x54e   : > { %734 = vrot.lane.b32.xlu1 %v1442_v38, %s1693_s10 }
 0x54f   : > { %v1444_v39 = vpop.eup %1443 }
 0x550   : > { %736 = vrot.lane.b32.xlu0 %v1444_v39, %s1693_s10 }
 0x5c0   : > { %v735_v40 = vpop.permute.xlu1 %734 }
 0x5c1   : > { %v740_v42 = vmul.f32 %v1438_v23, %v735_v40 }
 0x5c2   : > { %v737_v41 = vpop.permute.xlu0 %736 }
 0x5c3   : > { %v741_v43 = vmul.f32 %v1440_v27, %v737_v41 }
 0x5c5   : > { %v746_v44 = vpack.c.bf16 %v741_v43, %v740_v42 }
 0x5c7   : > { %748 = vrot.lane.b32.xlu1 %v746_v44, %s1692_s28 }
 0x639   : > { %v749_v55 = vpop.permute.xlu1 %748 }
 0x63a   : > { %1274 = vmatmul.mubr.msk.bf16.vlgmr.msra.gmra.mrb[8].mxu1 %vm537_vm2, %v749_v55 }
 0x63b   : > { %1278 = vmatpush3.bf16.msra.mxu1 %v1957_v7  ;;  %1281 = vmatprep.mubr.msk.bf16.mxu1 %vm1691_vm1, %v1690_v3 }
 0x63c   : > { %1279 = vmatprep.subr.bf16.mxu1 %v1690_v3 }
 0x63f   : > { %1280 = vmatpush3.bf16.msra.mxu1 %v1960_v9 }
 0x70d   : > { %v787_v57 = vpop.f32.mrb[8].mxu1 }
 0x70e   : > { %v794_v58 = vadd.f32 %v787_v57, %v744_v56  ;;  %v1275_v59 = vpop.f32.mrb[9].mxu1 }
 0x70f   : > { %v790_v60 = vpop.f32.mrb[10].mxu1 }
 0x710   : > { %1445 = vtanh.f32 %v794_v58  ;;  %v795_v61 = vadd.f32 %v790_v60, %v745_v24  ;;  %v1276_v62 = vpop.f32.mrb[11].mxu1  ;;  %v1186_v0 = vmul.f32 -1.442695, %v794_v58 }
 0x712   : > { %1447 = vtanh.f32 %v795_v61  ;;  %v1187_v3 = vmul.f32 -1.442695, %v795_v61 }
 0x713   : > { %1449 = vpow2.f32 %v1186_v0 }
 0x714   : > { %1451 = vpow2.f32 %v1187_v3  ;;  %v1695_v3 = vmov (!%p1191_p4), 0.0  }
 0x715   : > { %1285 = vmatprep.subr.bf16.mxu0 (!%p1191_p4), %v1695_v3  ;;  %1289 = vmatprep.mubr.msk.bf16.mxu0 (!%p1191_p4), %vm1697_vm3, %v1695_v3 }
 0x71a   : > { %v1446_v63 = vpop.eup %1445 }
 0x71b   : > { %814 = vrot.lane.b32.xlu0 %v1446_v63, %s1693_s10 }
 0x71c   : > { %v1448_v7 = vpop.eup %1447 }
 0x71d   : > { %816 = vrot.lane.b32.xlu1 %v1448_v7, %s1693_s10  ;;  %v1450_v9 = vpop.eup %1449 }
 0x71e   : > { %v1452_v1 = vpop.eup %1451  ;;  %v802_v2 = vadd.f32 1.0, %v1450_v9  ;;  %v1477_v9 = vld [vmem:[#allocation11] sm:$0xff] (!%p1191_p4)  }
 0x71f   : > { %v803_v4 = vadd.f32 1.0, %v1452_v1  ;;  %1286 = vmatpush3.bf16.msra.mxu0 (!%p1191_p4), %v1477_v9  ;;  %v1478_v1 = vld [vmem:[#allocation11 + $0x8] sm:$0xff] (!%p1191_p4)  }
 0x720   : > { %1453 = vrcp.f32 %v802_v2  ;;  %1287 = vmatprep.subr.bf16.mxu0 (!%p1191_p4), %v1695_v3 }
 0x721   : > { %1455 = vrcp.f32 %v803_v4  ;;  %v1192_v4 = vld [vmem:[%s2109_s5] ss:$0 sm:$0xff] (!%p1191_p4) }
 0x723   : > { %1288 = vmatpush3.bf16.msra.mxu0 (!%p1191_p4), %v1478_v1 }
 0x72a   : > { %v1454_v5 = vpop.eup %1453 }
 0x72b   : > { %v1456_v10 = vpop.eup %1455  ;;  %v810_v13 = vmul.f32 %v1454_v5, %v2006_v32  ;;  %v847_v32 = vunpack.c.h.bf16 %v2021_v53 }
 0x72c   : > { %v811_v16 = vmul.f32 %v1456_v10, %v2009_v35 }
 0x78d   : > { %v815_v6 = vpop.permute.xlu0 %814 }
 0x78e   : > { %v820_v8 = vmul.f32 %v1454_v5, %v815_v6 }
 0x78f   : > { %v817_v11 = vpop.permute.xlu1 %816 }
 0x790   : > { %824 = vrot.lane.b32.xlu0 %v820_v8, %s1692_s28  ;;  %v821_v12 = vmul.f32 %v1456_v10, %v817_v11 }
 0x792   : > { %826 = vrot.lane.b32.xlu1 %v821_v12, %s1692_s28 }
 0x802   : > { %v825_v14 = vpop.permute.xlu0 %824 }
 0x803   : > { %v830_v15 = vadd.f32 %v825_v14, %v810_v13 }
 0x804   : > { %v827_v17 = vpop.permute.xlu1 %826 }
 0x805   : > { %1457 = vtanh.f32 %v830_v15  ;;  %v831_v18 = vadd.f32 %v827_v17, %v811_v16 }
 0x807   : > { %1459 = vtanh.f32 %v831_v18 }
 0x80f   : > { %v1458_v19 = vpop.eup %1457 }
 0x810   : > { %836 = vrot.lane.b32.xlu0 %v1458_v19, %s1693_s10 }
 0x811   : > { %v1460_v20 = vpop.eup %1459 }
 0x812   : > { %838 = vrot.lane.b32.xlu1 %v1460_v20, %s1693_s10 }
 0x882   : > { %v837_v21 = vpop.permute.xlu0 %836 }
 0x883   : > { %v842_v23 = vmul.f32 %v1454_v5, %v837_v21 }
 0x884   : > { %v839_v22 = vpop.permute.xlu1 %838 }
 0x885   : > { %v843_v25 = vmul.f32 %v1456_v10, %v839_v22 }
 0x887   : > { %v848_v26 = vpack.c.bf16 %v843_v25, %v842_v23 }
 0x889   : > { %850 = vrot.lane.b32.xlu0 %v848_v26, %s1692_s28 }
 0x8fb   : > { %v851_v27 = vpop.permute.xlu0 %850 }
 0x8fc   : > { %1282 = vmatmul.mubr.msk.bf16.vlgmr.msra.gmra.mrb[12].mxu1 %vm537_vm2, %v851_v27 }
 0x9cf   : > { %v889_v29 = vpop.f32.mrb[12].mxu1 }
 0x9d0   : > { %v896_v30 = vadd.f32 %v889_v29, %v846_v28  ;;  %v1283_v31 = vpop.f32.mrb[13].mxu1 }
 0x9d1   : > { %v892_v33 = vpop.f32.mrb[14].mxu1 }
 0x9d2   : > { %1461 = vtanh.f32 %v896_v30  ;;  %v897_v34 = vadd.f32 %v892_v33, %v847_v32  ;;  %v1284_v35 = vpop.f32.mrb[15].mxu1  ;;  %v1189_v38 = vmul.f32 -1.442695, %v896_v30 }
 0x9d4   : > { %1463 = vtanh.f32 %v897_v34  ;;  %v1190_v39 = vmul.f32 -1.442695, %v897_v34 }
 0x9d5   : > { %1465 = vpow2.f32 %v1189_v38 }
 0x9d6   : > { %1467 = vpow2.f32 %v1190_v39 }
 0x9dc   : > { %v1462_v36 = vpop.eup %1461 }
 0x9dd   : > { %916 = vrot.lane.b32.xlu1 %v1462_v36, %s1693_s10 }
 0x9de   : > { %v1464_v37 = vpop.eup %1463 }
 0x9df   : > { %918 = vrot.lane.b32.xlu0 %v1464_v37, %s1693_s10  ;;  %v1466_v40 = vpop.eup %1465 }
 0x9e0   : > { %v1468_v41 = vpop.eup %1467  ;;  %v904_v42 = vadd.f32 1.0, %v1466_v40 }
 0x9e1   : > { %v905_v43 = vadd.f32 1.0, %v1468_v41 }
 0x9e2   : > { %1469 = vrcp.f32 %v904_v42 }
 0x9e3   : > { %1471 = vrcp.f32 %v905_v43 }
 0x9ec   : > { %v1470_v44 = vpop.eup %1469 }
 0x9ed   : > { %v1472_v47 = vpop.eup %1471  ;;  %v912_v50 = vmul.f32 %v1470_v44, %v830_v15 }
 0x9ee   : > { %v913_v53 = vmul.f32 %v1472_v47, %v831_v18 }
 0xa4f   : > { %v917_v45 = vpop.permute.xlu1 %916 }
 0xa50   : > { %v922_v46 = vmul.f32 %v1470_v44, %v917_v45 }
 0xa51   : > { %v919_v48 = vpop.permute.xlu0 %918 }
 0xa52   : > { %926 = vrot.lane.b32.xlu1 %v922_v46, %s1692_s28  ;;  %v923_v49 = vmul.f32 %v1472_v47, %v919_v48 }
 0xa54   : > { %928 = vrot.lane.b32.xlu0 %v923_v49, %s1692_s28 }
 0xac4   : > { %v927_v51 = vpop.permute.xlu1 %926 }
 0xac5   : > { %v932_v52 = vadd.f32 %v927_v51, %v912_v50 }
 0xac6   : > { %v929_v54 = vpop.permute.xlu0 %928 }
 0xac7   : > { %1473 = vtanh.f32 %v932_v52  ;;  %v933_v55 = vadd.f32 %v929_v54, %v913_v53 }
 0xac9   : > { %1475 = vtanh.f32 %v933_v55 }
 0xad1   : > { %v1474_v56 = vpop.eup %1473 }
 0xad2   : > { %938 = vrot.lane.b32.xlu1 %v1474_v56, %s1693_s10 }
 0xad3   : > { %v1476_v57 = vpop.eup %1475 }
 0xad4   : > { %940 = vrot.lane.b32.xlu0 %v1476_v57, %s1693_s10 }
 0xb44   : > { %v939_v58 = vpop.permute.xlu1 %938 }
 0xb45   : > { %v944_v59 = vmul.f32 %v1470_v44, %v939_v58 }
 0xb46   : > { %v941_v24 = vpop.permute.xlu0 %940 }
 0xb47   : > { %948 = vrot.lane.b32.xlu1 %v944_v59, %s1692_s28  ;;  %v945_v60 = vmul.f32 %v1472_v47, %v941_v24 }
 0xb49   : > { %950 = vrot.lane.b32.xlu0 %v945_v60, %s1692_s28  ;;  %v970_v0 = vpack.c.bf16 (!%p1191_p4), %v945_v60, %v944_v59 }
 0xb4b   : > { %958 = vrot.lane.b32.xlu1 %v932_v52, %s1694_s12 }
 0xb4d   : > { %960 = vrot.lane.b32.xlu0 %v933_v55, %s1694_s12 }
 0xb51   : > { %983 = vrot.lane.b32.xlu0 (!%p1191_p4), %v970_v0, %s1696_s20 }
 0xbb9   : > { %v949_v61 = vpop.permute.xlu1 %948 }
 0xbba   : > { %954 = vst.msk [vmem:[#allocation2] sm:$0xff] %vm537_vm2, %v949_v61  ;;  %969 = sbr.rel (%p1191_p4) target bundleno = 3229 (0xc9d), region = 68 }
 0xbbb   : > { %v951_v62 = vpop.permute.xlu0 %950 }
 0xbbc   : > { %955 = vst.msk [vmem:[#allocation2 + $0x8] sm:$0xff] %vm537_vm2, %v951_v62 }
 0xbbd   : > { %v959_v63 = vpop.permute.xlu1 %958 }
 0xbbe   : > { %964 = vst.msk [vmem:[#allocation3] sm:$0xff] %vm537_vm2, %v959_v63 }
 0xbbf   : > { %v961_v7 = vpop.permute.xlu0 %960 }
 0xbc0   : > { %965 = vst.msk [vmem:[#allocation3 + $0x8] sm:$0xff] %vm537_vm2, %v961_v7 }
 0xbc3   : > { %v984_v2 = vpop.permute.xlu0 %983 }
 0xbc4   : > { %1290 = vmatmul.mubr.msk.bf16.vlgmr.msra.gmra.mrb[0].mxu0 %vm537_vm2, %v984_v2 }
 0xc97   : > { %v1034_v5 = vpop.f32.mrb[0].mxu0 }
 0xc98   : > { %v1035_v6 = vadd.f32 %v1192_v4, %v1034_v5  ;;  %v1291_v8 = vpop.f32.mrb[1].mxu0 }
 0xc99   : > { %v1037_v10 = vpop.f32.mrb[2].mxu0 }
 0xc9a   : > { %1041 = vst [vmem:[#allocation13] sm:$0xff] %v1035_v6  ;;  %v1038_v11 = vadd.f32 %v1192_v4, %v1037_v10  ;;  %v1292_v12 = vpop.f32.mrb[3].mxu0 }
 0xc9c   : > { %1042 = vst [vmem:[#allocation13 + $0x8] sm:$0xff] %v1038_v11 }
 0xc9d PF: > { %s2125_s24 = sadd.s32 4294967295, %s1681_s26   ;;  %s1698_s14 = smov [#allocation13]  }
 0xc9e   : > { %p2060_p5 = scmp.eq.s32.totalorder %s2125_s24, 1  ;;  %s1052_s7 = sshll.u32 %s1698_s14, 4  ;;  %s1053_s7 = int_to_ptr.vmem [resolvable:$true] %s1052_s7 }
 0xc9f   : > { %s1593_s15 = scalar_lea.vmem %s1053_s7, 256  ;;  %p1600_p0 = scmp.lt.s32.totalorder %s1053_s7, %s1053_s7 }
 0xca0   : > { %p1594_p9 = scmp.ne.s32.totalorder %s1053_s7, %s1593_s15  ;;  %p1601_p2 = scmp.lt.s32.totalorder %s1593_s15, %s1593_s15 }
 0xca2   : > { %p1595_p12 = pnand %p1594_p9, %p2060_p5  ;;  %p1602_p6 = por %p1601_p2, %p1600_p0 }
 0xca4   : > { %p1596_p13 = pneg %p1595_p12 }
 0xca6   : > { %p1603_p10 = pnand %p1602_p6, %p1596_p13 }
 0xca8   : > { %1606 = shalt.err (!%p1603_p10)
}
 0xca9   : > { %s1607_s17 = scalar_lea.hbm %s2110_s6, 256 }
 0xcaa   : > { %p1608_p1 = scmp.ne.s32.totalorder %s2110_s6, %s1607_s17  ;;  %p1613_p11 = scmp.lt.u32.totalorder %s1607_s17, %s2110_s6 }
 0xcac   : > { %p1609_p3 = pnand %p1608_p1, %p2060_p5 }
 0xcae   : > { %p1610_p8 = pneg %p1609_p3 }
 0xcb0   : > { %p1615_p7 = pnand %p1613_p11, %p1610_p8 }
 0xcb2   : > { %1618 = shalt.err (!%p1615_p7)
}
 0xcb3   : > { %s1699_s30 = smov 128   ;;  %s1700_s10 = smov 8  }
 0xcb4   : > { %1308 = dma.vmem_to_hbm [thread:$0]  (%p2060_p5), %s1053_s7, 256, %s2110_s6, [#allocation7], %s1699_s30, %s1699_s30, %s1700_s10  }
 0xcb5   : > { %1656 = dma.done.wait (%p2060_p5), [#allocation7], 256  }
 0xcb6   : > { %1658 = vsyncadd (%p2060_p5), [#allocation7], 4294967040 }
 0xcb7 PF: > { %s22_s26 = sadd.s32 1, %s1681_s26   ;;  %s2127_s8 = smov %s1891_s21 }
 0xcb8   : > { %p19_p4 = scmp.ge.s32.totalorder %s22_s26, 4   ;;  %s2128_s21 = smov %s1665_s22 }
 0xcb9   : > { %s2129_s22 = smov %s1669_s23  ;;  %s2130_s23 = smov %s2127_s8 }
 0xcba   : > { %s2131_s24 = smov %s1677_s25  ;;  %s2132_s25 = smov %s2134_s19 }
 0xcbb   :  { %21 = sbr.rel (!%p19_p4) target bundleno = 7 (0x7), region = 105 }
 0xcc2   :  { %1068 = vsyncpa [#allocation6], 1 }
 0xcc3   :  { %1070 = vsyncpa [#allocation6 + $0x1], 1 }
 0xcc4   :  { %1071 = vsyncpa [#allocation9], 1 }
 0xcc5   :  { %1072 = vsyncpa [#allocation12], 1 }
 0xcc6   :  { %1073 = vsyncpa [#allocation7], 1 }
 0xcc7   :  { %1075 = vsyncpa [#allocation7 + $0x1], 1 }

</bundles_post_ra>
